<compile_context>
chip_gen: v6e
topology: v6e:2x2x1
jax: 0.10.0
libtpu: 0.0.40
codegen_flags: <defaults>
</compile_context>

<pallas_src>
import functools

import jax
import jax.numpy as jnp
from jax.experimental import pallas as pl
from jax.experimental.pallas import tpu as pltpu

KERNEL_SIZE = 4
STRIDE = 2

# Padded bytes of input slabs per grid step: big enough to amortize per-step pipeline
# overhead, small enough that block + intermediates double-buffer comfortably inside
# the default scoped-VMEM limit on every chip generation (incl. v7x's smaller VMEM).
_TARGET_BLOCK_BYTES = 512 * 1024


def _round_up(v, m):
    return (v + m - 1) // m * m


def _maxpool_kernel(x_ref, o_ref, *, h_out, w_out):
    """Fused 4x4 / stride-2 max pool over a stack of (sublane=H, lane=W) slabs."""
    h_eff = STRIDE * (h_out - 1) + KERNEL_SIZE   # input rows covered by some window
    w_eff = STRIDE * (w_out - 1) + KERNEL_SIZE   # input cols covered by some window
    h_map = STRIDE * (h_out - 1) + 1             # stride-1 window-max map extents
    w_map = STRIDE * (w_out - 1) + 1

    nb = x_ref.shape[0]
    dtype = x_ref.dtype
    x = x_ref[...][:, :h_eff, :w_eff]

    # 4-tap running max along H (sublane axis): unit-stride shifted slices only (VPU).
    h02 = jnp.maximum(x[:, : h_eff - 2, :], x[:, 2:, :])
    hmax = jnp.maximum(h02[:, :h_map, :], h02[:, 1 : h_map + 1, :])   # (nb, h_map, w_eff)

    # Row decimation (keep rows 0, 2, 4, ...) as a 0/1 selection matmul on the MXU.
    r_out = jax.lax.broadcasted_iota(jnp.int32, (h_out, h_map), 0)
    r_map = jax.lax.broadcasted_iota(jnp.int32, (h_out, h_map), 1)
    sel_h = jnp.where(r_map == STRIDE * r_out, 1.0, 0.0).astype(dtype)
    sel_h = jnp.broadcast_to(sel_h, (nb, h_out, h_map))
    hsel = jnp.einsum(
        "bih,bhw->biw", sel_h, hmax,
        preferred_element_type=jnp.float32,
        precision=jax.lax.Precision.HIGHEST)                          # (nb, h_out, w_eff)

    # 4-tap running max along W (lane axis), now on the already-decimated rows.
    w02 = jnp.maximum(hsel[:, :, : w_eff - 2], hsel[:, :, 2:])
    wmax = jnp.maximum(w02[:, :, :w_map], w02[:, :, 1 : w_map + 1])   # (nb, h_out, w_map)

    # Column decimation (keep cols 0, 2, 4, ...) as a second selection matmul.
    c_map = jax.lax.broadcasted_iota(jnp.int32, (w_map, w_out), 0)
    c_out = jax.lax.broadcasted_iota(jnp.int32, (w_map, w_out), 1)
    sel_w = jnp.where(c_map == STRIDE * c_out, 1.0, 0.0).astype(jnp.float32)
    sel_w = jnp.broadcast_to(sel_w, (nb, w_map, w_out))
    out = jnp.einsum(
        "bhw,bwj->bhj", wmax, sel_w,
        preferred_element_type=jnp.float32,
        precision=jax.lax.Precision.HIGHEST)                          # (nb, h_out, w_out)

    # Single dense store of the final pooled block.
    o_ref[...] = out.astype(o_ref.dtype)


@jax.jit
def maxpool2d_pallas(x_nchw):
    """nn.MaxPool2d(kernel_size=4, stride=2) with PyTorch NCHW semantics."""
    N, C, H, W = x_nchw.shape
    assert H >= KERNEL_SIZE and W >= KERNEL_SIZE, "input smaller than pool window"
    h_out = (H - KERNEL_SIZE) // STRIDE + 1
    w_out = (W - KERNEL_SIZE) // STRIDE + 1

    nc = N * C
    # Free, contiguous view: (N, C, H, W) -> (N*C, H, W).  No transpose, no copy.
    x_flat = x_nchw.reshape(nc, H, W)

    # VMEM-tile-aware slab footprint ((8,128) padding); fold as many (n, c) slabs into
    # one block as the per-step byte target allows.
    slab_bytes = _round_up(H, 8) * _round_up(W, 128) * x_nchw.dtype.itemsize
    nc_block = max(1, min(nc, _TARGET_BLOCK_BYTES // max(1, slab_bytes)))
    grid = (pl.cdiv(nc, nc_block),)

    kernel = functools.partial(_maxpool_kernel, h_out=h_out, w_out=w_out)

    pooled = pl.pallas_call(
        kernel,
        out_shape=jax.ShapeDtypeStruct((nc, h_out, w_out), x_nchw.dtype),
        grid=grid,
        in_specs=[pl.BlockSpec((nc_block, H, W), lambda i: (i, 0, 0))],
        out_specs=pl.BlockSpec((nc_block, h_out, w_out), lambda i: (i, 0, 0)),
        compiler_params=pltpu.CompilerParams(dimension_semantics=("parallel",)),
    )(x_flat)

    # Free reshape back to NCHW.
    return pooled.reshape(N, C, h_out, w_out)


def _reference_maxpool2d(x_nchw):
    return jax.lax.reduce_window(
        x_nchw,
        -jnp.inf,
        jax.lax.max,
        window_dimensions=(1, 1, KERNEL_SIZE, KERNEL_SIZE),
        window_strides=(1, 1, STRIDE, STRIDE),
        padding="VALID",
    )


if __name__ == "__main__":
    key = jax.random.PRNGKey(0)
    # Small NCHW input consistent with the module's forward: (batch=2, C=4, H=16, W=16).
    x = jax.random.normal(key, (2, 4, 16, 16), dtype=jnp.float32)

    out = jax.block_until_ready(maxpool2d_pallas(x))

    ref = _reference_maxpool2d(x)
    assert out.shape == (2, 4, 7, 7), out.shape
    # The 0/1 selection matmuls are exact on the native f32 MXU path; the tolerance
    # only guards the multi-pass f32 decomposition corner case.
    assert jnp.allclose(out, ref, rtol=1e-5, atol=1e-4), "Pallas max-pool mismatch vs reference"

    print("KERNEL_OK")
</pallas_src>

<mosaic_0001>
module attributes {stable_mosaic.version = 11 : i64} {
  func.func @_maxpool_kernel(%arg0: i32, %arg1: memref<8x16x16xf32, #tpu.memory_space<vmem>>, %arg2: memref<8x7x7xf32, #tpu.memory_space<vmem>>) attributes {dimension_semantics = [#tpu.dimension_semantics<parallel>], iteration_bounds = array<i64: 1>, scalar_prefetch = 0 : i64, scratch_operands = 0 : i64, tpu.core_type = #tpu.core_type<tc>, window_params = [{transform_indices = @transform_0, window_bounds = array<i64: 8, 16, 16>}, {transform_indices = @transform_1, window_bounds = array<i64: 8, 7, 7>}]} {
    %c0 = arith.constant 0 : index
    %c0_0 = arith.constant 0 : index
    %c0_1 = arith.constant 0 : index
    %0 = vector.load %arg1[%c0, %c0_0, %c0_1] : memref<8x16x16xf32, #tpu.memory_space<vmem>>, vector<8x16x16xf32>
    %1 = vector.extract_strided_slice %0 {offsets = [0, 0, 0], sizes = [8, 14, 16], strides = [1, 1, 1]} : vector<8x16x16xf32> to vector<8x14x16xf32>
    %2 = vector.extract_strided_slice %0 {offsets = [0, 2, 0], sizes = [8, 14, 16], strides = [1, 1, 1]} : vector<8x16x16xf32> to vector<8x14x16xf32>
    %3 = arith.maximumf %1, %2 : vector<8x14x16xf32>
    %4 = vector.extract_strided_slice %3 {offsets = [0, 0, 0], sizes = [8, 13, 16], strides = [1, 1, 1]} : vector<8x14x16xf32> to vector<8x13x16xf32>
    %5 = vector.extract_strided_slice %3 {offsets = [0, 1, 0], sizes = [8, 13, 16], strides = [1, 1, 1]} : vector<8x14x16xf32> to vector<8x13x16xf32>
    %6 = arith.maximumf %4, %5 : vector<8x13x16xf32>
    %7 = tpu.iota {dimensions = array<i32: 0>} : vector<7x13xi32>
    %8 = tpu.iota {dimensions = array<i32: 1>} : vector<7x13xi32>
    %c2_i32 = arith.constant 2 : i32
    %9 = vector.broadcast %c2_i32 : i32 to vector<7x13xi32>
    %10 = arith.muli %9, %7 : vector<7x13xi32>
    %11 = arith.cmpi eq, %8, %10 : vector<7x13xi32>
    %cst = arith.constant 1.000000e+00 : f32
    %cst_2 = arith.constant 0.000000e+00 : f32
    %12 = vector.broadcast %cst : f32 to vector<7x13xf32>
    %13 = vector.broadcast %cst_2 : f32 to vector<7x13xf32>
    %14 = arith.select %11, %12, %13 : vector<7x13xi1>, vector<7x13xf32>
    %15 = vector.shape_cast %14 : vector<7x13xf32> to vector<1x7x13xf32>
    %16 = vector.broadcast %15 : vector<1x7x13xf32> to vector<8x7x13xf32>
    "tpu.trace_start"() <{level = 10 : i32, message = "bih,bhw->biw"}> : () -> ()
    %cst_3 = arith.constant dense<0.000000e+00> : vector<8x7x16xf32>
    %17 = tpu.matmul %16, %6, %cst_3 {dimension_numbers = #tpu.dot_dimension_numbers<[2], [1], [1], [2], [0, 0, 0, 1, 1, 2], [0], [0]>, precision = #tpu.contract_precision<fp32>} : vector<8x7x13xf32>, vector<8x13x16xf32>, vector<8x7x16xf32> -> vector<8x7x16xf32>
    "tpu.trace_stop"() : () -> ()
    %18 = vector.extract_strided_slice %17 {offsets = [0, 0, 0], sizes = [8, 7, 14], strides = [1, 1, 1]} : vector<8x7x16xf32> to vector<8x7x14xf32>
    %19 = vector.extract_strided_slice %17 {offsets = [0, 0, 2], sizes = [8, 7, 14], strides = [1, 1, 1]} : vector<8x7x16xf32> to vector<8x7x14xf32>
    %20 = arith.maximumf %18, %19 : vector<8x7x14xf32>
    %21 = vector.extract_strided_slice %20 {offsets = [0, 0, 0], sizes = [8, 7, 13], strides = [1, 1, 1]} : vector<8x7x14xf32> to vector<8x7x13xf32>
    %22 = vector.extract_strided_slice %20 {offsets = [0, 0, 1], sizes = [8, 7, 13], strides = [1, 1, 1]} : vector<8x7x14xf32> to vector<8x7x13xf32>
    %23 = arith.maximumf %21, %22 : vector<8x7x13xf32>
    %24 = tpu.iota {dimensions = array<i32: 0>} : vector<13x7xi32>
    %25 = tpu.iota {dimensions = array<i32: 1>} : vector<13x7xi32>
    %c2_i32_4 = arith.constant 2 : i32
    %26 = vector.broadcast %c2_i32_4 : i32 to vector<13x7xi32>
    %27 = arith.muli %26, %25 : vector<13x7xi32>
    %28 = arith.cmpi eq, %24, %27 : vector<13x7xi32>
    %cst_5 = arith.constant 1.000000e+00 : f32
    %cst_6 = arith.constant 0.000000e+00 : f32
    %29 = vector.broadcast %cst_5 : f32 to vector<13x7xf32>
    %30 = vector.broadcast %cst_6 : f32 to vector<13x7xf32>
    %31 = arith.select %28, %29, %30 : vector<13x7xi1>, vector<13x7xf32>
    %32 = vector.shape_cast %31 : vector<13x7xf32> to vector<1x13x7xf32>
    %33 = vector.broadcast %32 : vector<1x13x7xf32> to vector<8x13x7xf32>
    "tpu.trace_start"() <{level = 10 : i32, message = "bhw,bwj->bhj"}> : () -> ()
    %cst_7 = arith.constant dense<0.000000e+00> : vector<8x7x7xf32>
    %34 = tpu.matmul %23, %33, %cst_7 {dimension_numbers = #tpu.dot_dimension_numbers<[2], [1], [1], [2], [0, 0, 0, 1, 1, 2], [0], [0]>, precision = #tpu.contract_precision<fp32>} : vector<8x7x13xf32>, vector<8x13x7xf32>, vector<8x7x7xf32> -> vector<8x7x7xf32>
    "tpu.trace_stop"() : () -> ()
    %c0_8 = arith.constant 0 : index
    %c0_9 = arith.constant 0 : index
    %c0_10 = arith.constant 0 : index
    %35 = vector.load %arg2[%c0_8, %c0_9, %c0_10] : memref<8x7x7xf32, #tpu.memory_space<vmem>>, vector<8x7x7xf32>
    tpu.vector_store %arg2[%c0_8, %c0_9, %c0_10], %34 {strides = array<i32>} : memref<8x7x7xf32, #tpu.memory_space<vmem>>, vector<8x7x7xf32>,
    return
  }
  func.func @transform_0(%arg0: i32) -> (i32, i32, i32) {
    %c0_i32 = arith.constant 0 : i32
    %c0_i32_0 = arith.constant 0 : i32
    %c0_i32_1 = arith.constant 0 : i32
    return %arg0, %c0_i32, %c0_i32_0 : i32, i32, i32
  }
  func.func @transform_1(%arg0: i32) -> (i32, i32, i32) {
    %c0_i32 = arith.constant 0 : i32
    %c0_i32_0 = arith.constant 0 : i32
    %c0_i32_1 = arith.constant 0 : i32
    return %arg0, %c0_i32, %c0_i32_0 : i32, i32, i32
  }
}

</mosaic_0001>

<bundles_post_ra>
// kernel: maxpool2d_pallas.1
= control target key start
LH: loop header
LB: loop body
LE: loop exit
PB: predicated region body
PF: predicated region fallthrough
CT: control target
= control target key end

     0   :  { %6 = vsyncpa [#allocation3], 0  ;;  %s8705_s6 = smov [#allocation2]   ;;  %s9715_s0 = inlined_call_operand.hbm [shape: f32[8,16,16], index: 0, kind: input, shape index: {}]   ;;  %s9716_s1 = inlined_call_operand.vmem [shape: f32[8,7,7], index: 1, kind: output, shape index: {}]  }
   0x1   :  { %s12_s7 = sshll.u32 %s8705_s6, 4  ;;  %s13_s7 = int_to_ptr.vmem [resolvable:$true] %s12_s7 }
   0x2   :  { %s8691_s8 = scalar_lea.vmem %s13_s7, 2048  ;;  %p8696_p1 = scmp.lt.s32.totalorder %s13_s7, %s13_s7 }
   0x3   :  { %p8692_p0 = scmp.ne.s32.totalorder %s13_s7, %s8691_s8  ;;  %p8697_p2 = scmp.lt.s32.totalorder %s8691_s8, %s8691_s8 }
   0x5   :  { %p8698_p3 = por %p8697_p2, %p8696_p1 }
   0x7   :  { %p8699_p4 = pnand %p8698_p3, %p8692_p0 }
   0x9   :  { %8702 = shalt.err (!%p8699_p4)
}
   0xa   :  { %s8706_s9 = smov 128   ;;  %s8707_s10 = smov 8  }
   0xb   :  { %18 = dma.hbm_to_vmem [thread:$0]  %s9715_s0, 2048, %s13_s7, [#allocation3], %s8706_s9, %s8706_s9, %s8707_s10  }
   0xc   :  { %8703 = dma.done.wait [#allocation3], 2048  }
   0xd   :  { %8704 = vsyncadd [#allocation3], 4294965248  ;;  %v8708_v0 = vmov 0.0   ;;  %v184_v1 = vlaneseq  ;;  %vm8709_vm0 = vmmov 0   ;;  %vm191_vm1 = vcmask 105472   ;;  %v23_v5 = vld [vmem:[#allocation2 + $0x8] sm:$0xff] }
   0xe   :  { %8003 = vmatprep.subr.mxu0 %v8708_v0  ;;  %8010 = vmatprep.subr.mxu1 %v8708_v0  ;;  %v22_v6 = vld [vmem:[#allocation2] sm:$0xff]  ;;  %vm54_vm2 = vcmask 1045504   ;;  %v25_v7 = vld [vmem:[#allocation2 + $0x18] sm:$0xff]  ;;  %v56_v8 = vrot.slane %v23_v5, 2  ;;  %v24_v12 = vld [vmem:[#allocation2 + $0x10] sm:$0xff]  ;;  %vm127_vm4 = vcmask 1046528  }
   0xf   :  { %8007 = vmatprep.mubr.msk.f32.mxu0 %vm8709_vm0, %v8708_v0  ;;  %8014 = vmatprep.mubr.msk.f32.mxu1 %vm8709_vm0, %v8708_v0  ;;  %v8732_v2 = vshrl.u32 %v184_v1, 7  ;;  %v8734_v3 = vand.u32 127, %v184_v1  ;;  %v55_v9 = vrot.slane %v22_v6, 2  ;;  %v59_v11 = vrot.slane %v25_v7, 2  ;;  %v27_v30 = vld [vmem:[#allocation2 + $0x28] sm:$0xff]  ;;  %v26_v31 = vld [vmem:[#allocation2 + $0x20] sm:$0xff] }
  0x10   :  { %v58_v14 = vrot.slane %v24_v12, 2  ;;  %v96_v15 = vmax.f32 %v23_v5, %v56_v8  ;;  %vm195_vm5 = vcmask 1044480   ;;  %v62_v37 = vrot.slane %v27_v30, 2  ;;  %v31_v53 = vld [vmem:[#allocation2 + $0x48] sm:$0xff]  ;;  %v30_v54 = vld [vmem:[#allocation2 + $0x40] sm:$0xff]  ;;  %v33_v59 = vld [vmem:[#allocation2 + $0x58] sm:$0xff] }
  0x11   :  { %v188_v4 = vmul.u32 2, %v8732_v2  ;;  %v57_v16 = vsel %vm54_vm2, %v55_v9, %v56_v8  ;;  %v98_v18 = vmax.f32 %v25_v7, %v59_v11  ;;  %v61_v38 = vrot.slane %v26_v31, 2  ;;  %v32_v60 = vld [vmem:[#allocation2 + $0x50] sm:$0xff]  ;;  %v34_v5 = vld [vmem:[#allocation2 + $0x60] sm:$0xff]  ;;  %s8710_s0 = smov 126   ;;  %s8711_s13 = smov 127  }
  0x12   :  { %v95_v19 = vmax.f32 %v22_v6, %v57_v16  ;;  %v60_v20 = vsel %vm54_vm2, %v58_v14, %v59_v11  ;;  %v129_v21 = vrot.slane %v96_v15, 1  ;;  %v8769_v47 = vmax.f32 %v27_v30, %v62_v37 }
  0x13   :  { %vm189_vm3 = vcmp.eq.s32.totalorder %v8734_v3, %v188_v4  ;;  %v132_v23 = vrot.slane %v98_v18, 1  ;;  %v97_v24 = vmax.f32 %v24_v12, %v60_v20  ;;  %v63_v50 = vsel %vm54_vm2, %v61_v38, %v62_v37  ;;  %v35_v4 = vld [vmem:[#allocation2 + $0x68] sm:$0xff] }
  0x14   :  { %v8739_v10 = vsel %vm189_vm3, 1.0, %v8708_v0  ;;  %v128_v25 = vrot.slane %v95_v19, 1  ;;  %v169_v26 = vmax.f32 %v96_v15, %v129_v21  ;;  %v135_v57 = vrot.slane %v8769_v47, 1 }
  0x15   :  { %v193_v13 = vsel %vm191_vm1, %v8739_v10, 0  ;;  %v171_v28 = vmax.f32 %v98_v18, %v132_v23  ;;  %v131_v29 = vrot.slane %v97_v24, 1  ;;  %v8783_v58 = vmax.f32 %v26_v31, %v63_v50 }
  0x16   :  { %v8744_v17 = vsub.f32 %v193_v13, %v193_v13  ;;  %v130_v32 = vsel %vm127_vm4, %v128_v25, %v129_v21  ;;  %v197_v33 = vsel %vm195_vm5, %v169_v26, 0  ;;  %v68_v63 = vrot.slane %v31_v53, 2 }
  0x17   :  { %v168_v34 = vmax.f32 %v95_v19, %v130_v32  ;;  %v8754_v35 = vand.u32 4294901760, %v197_v33  ;;  %v133_v36 = vsel %vm127_vm4, %v131_v29, %v132_v23  ;;  %v659_v41 = vsel %vm195_vm5, %v171_v28, 0  ;;  %v29_v23 = vld [vmem:[#allocation2 + $0x38] sm:$0xff] }
  0x18   :  { %v8748_v22 = vand.u32 4294901760, %v8744_v17  ;;  %v170_v42 = vmax.f32 %v97_v24, %v133_v36  ;;  %v8767_v46 = vand.u32 4294901760, %v659_v41  ;;  %v67_v1 = vrot.slane %v30_v54, 2  ;;  %v28_v24 = vld [vmem:[#allocation2 + $0x30] sm:$0xff] }
  0x19   :  { %v8757_v39 = vand.u32 4294901760, %v168_v34  ;;  %8004 = vmatpush3.msra.mxu0 %v8754_v35  ;;  %v306_v43 = vsub.f32 %v197_v33, %v8754_v35  ;;  %v71_v6 = vrot.slane %v33_v59, 2  ;;  %v70_v7 = vrot.slane %v32_v60, 2 }
  0x1a   :  { %v269_v27 = vsub.f32 %v8744_v17, %v8748_v22  ;;  %8005 = vmatprep.subr.mxu0 %v8708_v0  ;;  %v8773_v49 = vand.u32 4294901760, %v170_v42  ;;  %v8780_v56 = vsub.f32 %v659_v41, %v8767_v46  ;;  %v173_v9 = vmax.f32 %v8769_v47, %v135_v57 }
  0x1b   :  { %v313_v44 = vsub.f32 %v168_v34, %v8757_v39  ;;  %8006 = vmatpush3.msra.mxu0 %v8757_v39  ;;  %v307_v45 = vand.u32 4294901760, %v306_v43  ;;  %v134_v11 = vrot.slane %v8783_v58, 1  ;;  %v8795_v12 = vmax.f32 %v31_v53, %v68_v63  ;;  %v36_v53 = vld [vmem:[#allocation2 + $0x70] sm:$0xff] }
  0x1c   :  { %v8759_v40 = vand.u32 4294901760, %v269_v27  ;;  %8017 = vmatprep.subr.mxu0 %v8708_v0  ;;  %v8788_v62 = vsub.f32 %v170_v42, %v8773_v49  ;;  %v769_v8 = vand.u32 4294901760, %v8780_v56  ;;  %v69_v14 = vsel %vm54_vm2, %v67_v1, %v68_v63 }
  0x1d   :  { %v314_v48 = vand.u32 4294901760, %v313_v44  ;;  %v308_v51 = vsub.f32 %v306_v43, %v307_v45  ;;  %v74_v15 = vrot.slane %v35_v4, 2  ;;  %v73_v16 = vrot.slane %v34_v5, 2 }
  0x1e   :  { %8008 = vmatmul.mubr.f32.vlgmr.msra.gmra.mxu0 %v8759_v40  ;;  %v776_v13 = vand.u32 4294901760, %v8788_v62  ;;  %v103_v18 = vmax.f32 %v30_v54, %v69_v14  ;;  %v8805_v19 = vmax.f32 %v33_v59, %v71_v6  ;;  %v72_v20 = vsel %vm54_vm2, %v70_v7, %v71_v6 }
  0x1f   :  { %8018 = vmatpush3.msra.mxu0 %v306_v43  ;;  %8021 = vmatprep.mubr.msk.f32.mxu0 %vm8709_vm0, %v8708_v0  ;;  %v315_v52 = vsub.f32 %v313_v44, %v314_v48  ;;  %v309_v55 = vand.u32 4294901760, %v308_v51  ;;  %v770_v21 = vsub.f32 %v8780_v56, %v769_v8  ;;  %v141_v25 = vrot.slane %v8795_v12, 1 }
  0x20   :  { %8019 = vmatprep.subr.mxu0 %v8708_v0  ;;  %v140_v26 = vrot.slane %v103_v18, 1  ;;  %v105_v27 = vmax.f32 %v32_v60, %v72_v20  ;;  %v777_v28 = vsub.f32 %v8788_v62, %v776_v13  ;;  %v1121_v29 = vsel %vm195_vm5, %v173_v9, 0 }
  0x21   :  { %8020 = vmatpush3.msra.mxu0 %v313_v44  ;;  %v316_v61 = vand.u32 4294901760, %v315_v52  ;;  %8011 = vmatpush3.msra.mxu1 %v309_v55  ;;  %v136_v30 = vsel %vm127_vm4, %v134_v11, %v135_v57  ;;  %v75_v31 = vsel %vm54_vm2, %v73_v16, %v74_v15  ;;  %v144_v33 = vrot.slane %v8805_v19, 1 }
  0x22   :  { %8022 = vmatmul.mubr.f32.vlgmr.msra.gmra.mxu0 %v8744_v17  ;;  %8031 = vmatprep.subr.mxu0 %v8708_v0  ;;  %v142_v32 = vsel %vm127_vm4, %v140_v26, %v141_v25  ;;  %v143_v34 = vrot.slane %v105_v27, 1  ;;  %v8832_v36 = vmax.f32 %v35_v4, %v74_v15  ;;  %v65_v37 = vrot.slane %v29_v23, 2 }
  0x23   :  { %8032 = vmatpush3.msra.mxu0 %v307_v45  ;;  %8012 = vmatprep.subr.mxu1 %v8708_v0  ;;  %v64_v38 = vrot.slane %v28_v24, 2  ;;  %v8836_v41 = vmax.f32 %v103_v18, %v142_v32  ;;  %v172_v42 = vmax.f32 %v8783_v58, %v136_v30  ;;  %v107_v44 = vmax.f32 %v34_v5, %v75_v31  ;;  %v37_v45 = vld [vmem:[#allocation2 + $0x78] sm:$0xff] }
  0x24   :  { %8033 = vmatprep.subr.mxu0 %v8708_v0  ;;  %8013 = vmatpush3.msra.mxu1 %v316_v61  ;;  %v145_v43 = vsel %vm127_vm4, %v143_v34, %v144_v33  ;;  %v8848_v47 = vand.u32 4294901760, %v1121_v29  ;;  %v147_v50 = vrot.slane %v8832_v36, 1  ;;  %v77_v52 = vrot.slane %v37_v45, 2 }
  0x25   :  { %8034 = vmatpush3.msra.mxu0 %v314_v48  ;;  %8015 = vmatmul.mubr.msk.f32.vlgmr.msra.gmra.mxu1 %vm191_vm1, %v8739_v10  ;;  %v8853_v48 = vmax.f32 %v105_v27, %v145_v43  ;;  %v146_v51 = vrot.slane %v107_v44, 1  ;;  %v8859_v54 = vand.u32 4294901760, %v172_v42  ;;  %v66_v55 = vsel %vm54_vm2, %v64_v38, %v65_v37 }
  0x26   :  { %8024 = vmatprep.subr.mxu1 %v8708_v0  ;;  %8028 = vmatprep.mubr.msk.f32.mxu1 %vm8709_vm0, %v8708_v0  ;;  %v102_v58 = vmax.f32 %v29_v23, %v65_v37  ;;  %v8872_v60 = vsub.f32 %v1121_v29, %v8848_v47  ;;  %v76_v61 = vrot.slane %v36_v53, 2  ;;  %v101_v63 = vmax.f32 %v28_v24, %v66_v55 }
  0x27   :  { %8025 = vmatpush3.msra.mxu1 %v8754_v35  ;;  %8035 = vmatprep.mubr.msk.f32.mxu0 %vm8709_vm0, %v8708_v0  ;;  %v148_v57 = vsel %vm127_vm4, %v146_v51, %v147_v50  ;;  %v8877_v1 = vmax.f32 %v37_v45, %v77_v52  ;;  %v8883_v4 = vsub.f32 %v172_v42, %v8859_v54  ;;  %vm7629_vm8 = vcmask 55296  }
  0x28   :  { %8026 = vmatprep.subr.mxu1 %v8708_v0  ;;  %8036 = vmatmul.mubr.msk.f32.vlgmr.msra.gmra.mxu0 %vm191_vm1, %v8739_v10  ;;  %v8867_v59 = vmax.f32 %v107_v44, %v148_v57  ;;  %v78_v5 = vsel %vm54_vm2, %v76_v61, %v77_v52  ;;  %v138_v6 = vrot.slane %v102_v58, 1  ;;  %v1231_v9 = vand.u32 4294901760, %v8872_v60 }
  0x29   :  { %8027 = vmatpush3.msra.mxu1 %v8757_v39  ;;  %8045 = vmatprep.subr.mxu0 %v8708_v0  ;;  %v109_v7 = vmax.f32 %v36_v53, %v78_v5  ;;  %v137_v11 = vrot.slane %v101_v63, 1  ;;  %v150_v14 = vrot.slane %v8877_v1, 1  ;;  %v1238_v16 = vand.u32 4294901760, %v8883_v4 }
  0x2a   :  { %8029 = vmatmul.mubr.f32.vlgmr.msra.gmra.mxu1 %v8748_v22  ;;  %8038 = vmatprep.subr.mxu1 %v8708_v0  ;;  %v175_v18 = vmax.f32 %v102_v58, %v138_v6  ;;  %v177_v31 = vmax.f32 %v8795_v12, %v141_v25  ;;  %v9038_v53 = vand.u32 4294901760, %v8853_v48  ;;  %v9089_v5 = vand.u32 4294901760, %v8867_v59 }
  0x2b   :  { %8039 = vmatpush3.msra.mxu1 %v8754_v35  ;;  %8046 = vmatpush3.msra.mxu0 %v8767_v46  ;;  %v771_v35 = vand.u32 4294901760, %v770_v21  ;;  %v149_v15 = vrot.slane %v109_v7, 1  ;;  %v139_v21 = vsel %vm127_vm4, %v137_v11, %v138_v6 }
  0x2c   :  { %8040 = vmatprep.subr.mxu1 %v8708_v0  ;;  %8042 = vmatprep.mubr.msk.f32.mxu1 %vm8709_vm0, %v8708_v0  ;;  %v174_v24 = vmax.f32 %v101_v63, %v139_v21  ;;  %v2045_v12 = vsel %vm195_vm5, %v177_v31, 0  ;;  %v2623_v55 = vsub.f32 %v8853_v48, %v9038_v53  ;;  %v181_v48 = vmax.f32 %v8832_v36, %v147_v50 }
  0x2d   :  { %8041 = vmatpush3.msra.mxu1 %v8757_v39  ;;  %8047 = vmatprep.subr.mxu0 %v8708_v0  ;;  %v778_v39 = vand.u32 4294901760, %v777_v28  ;;  %v8981_v38 = vand.u32 4294901760, %v2045_v12 }
  0x2e   :  { %8043 = vmatmul.mubr.msk.f32.vlgmr.msra.gmra.mxu1 %vm191_vm1, %v8739_v10  ;;  %8048 = vmatpush3.msra.mxu0 %v8773_v49  ;;  %v2624_v58 = vand.u32 4294901760, %v2623_v55  ;;  %v2969_v36 = vsel %vm195_vm5, %v181_v48, 0 }
  0x2f   :  { %8049 = vmatprep.mubr.msk.f32.mxu0 %vm8709_vm0, %v8708_v0  ;;  %8052 = vmatprep.subr.mxu1 %v8708_v0  ;;  %v2154_v42 = vsub.f32 %v2045_v12, %v8981_v38 }
  0x30   :  { %8050 = vmatmul.mubr.f32.vlgmr.msra.gmra.mxu0 %v8759_v40  ;;  %8053 = vmatpush3.msra.mxu1 %v771_v35  ;;  %v8987_v35 = vand.u32 4294901760, %v8836_v41  ;;  %v2625_v61 = vsub.f32 %v2623_v55, %v2624_v58 }
  0x31   :  { %8059 = vmatprep.subr.mxu0 %v8708_v0  ;;  %8054 = vmatprep.subr.mxu1 %v8708_v0  ;;  %v2155_v44 = vand.u32 4294901760, %v2154_v42 }
  0x32   :  { %8060 = vmatpush3.msra.mxu0 %v8780_v56  ;;  %8055 = vmatpush3.msra.mxu1 %v778_v39  ;;  %v151_v56 = vsel %vm127_vm4, %v149_v15, %v150_v14  ;;  %v2161_v43 = vsub.f32 %v8836_v41, %v8987_v35  ;;  %v179_v41 = vmax.f32 %v8805_v19, %v144_v33  ;;  %v2626_v63 = vand.u32 4294901760, %v2625_v61 }
  0x33   :  { %8056 = vmatprep.mubr.msk.f32.mxu1 %vm8709_vm0, %v8708_v0  ;;  %8061 = vmatprep.subr.mxu0 %v8708_v0  ;;  %v8909_v20 = vmax.f32 %v109_v7, %v151_v56  ;;  %v3085_v7 = vsub.f32 %v8867_v59, %v9089_v5  ;;  %v183_v59 = vmax.f32 %v8877_v1, %v150_v14 }
  0x34   :  { %8057 = vmatmul.mubr.msk.f32.vlgmr.msra.gmra.mxu1 %vm191_vm1, %v8739_v10  ;;  %8062 = vmatpush3.msra.mxu0 %v8788_v62  ;;  %v1239_v62 = vsub.f32 %v8883_v4, %v1238_v16  ;;  %v2162_v45 = vand.u32 4294901760, %v2161_v43  ;;  %v2507_v19 = vsel %vm195_vm5, %v179_v41, 0 }
  0x35   :  { %8063 = vmatprep.mubr.msk.f32.mxu0 %vm8709_vm0, %v8708_v0  ;;  %8066 = vmatprep.subr.mxu1 %v8708_v0  ;;  %v9032_v52 = vand.u32 4294901760, %v2507_v19  ;;  %v3086_v11 = vand.u32 4294901760, %v3085_v7  ;;  %v3431_v1 = vsel %vm195_vm5, %v183_v59, 0 }
  0x36   :  { %8064 = vmatmul.mubr.f32.vlgmr.msra.gmra.mxu0 %v8744_v17  ;;  %8067 = vmatpush3.msra.mxu1 %v8767_v46  ;;  %v2163_v39 = vsub.f32 %v2161_v43, %v2162_v45  ;;  %v9134_v56 = vand.u32 4294901760, %v3431_v1 }
  0x37   :  { %8073 = vmatprep.subr.mxu0 %v8708_v0  ;;  %8068 = vmatprep.subr.mxu1 %v8708_v0 }
  0x38   :  { %8074 = vmatpush3.msra.mxu0 %v769_v8  ;;  %8069 = vmatpush3.msra.mxu1 %v8773_v49  ;;  %v1232_v8 = vsub.f32 %v8872_v60, %v1231_v9  ;;  %v2164_v51 = vand.u32 4294901760, %v2163_v39  ;;  %v3540_v21 = vsub.f32 %v3431_v1, %v9134_v56 }
  0x39   :  { %8070 = vmatprep.mubr.msk.f32.mxu1 %vm8709_vm0, %v8708_v0  ;;  %8075 = vmatprep.subr.mxu0 %v8708_v0 }
  0x3a   :  { %8071 = vmatmul.mubr.f32.vlgmr.msra.gmra.mxu1 %v8748_v22  ;;  %8076 = vmatpush3.msra.mxu0 %v776_v13  ;;  %v1583_v13 = vsel %vm195_vm5, %v175_v18, 0  ;;  %v1233_v23 = vand.u32 4294901760, %v1232_v8  ;;  %v9140_v8 = vand.u32 4294901760, %v8909_v20 }
  0x3b   :  { %8077 = vmatprep.mubr.msk.f32.mxu0 %vm8709_vm0, %v8708_v0  ;;  %8080 = vmatprep.subr.mxu1 %v8708_v0  ;;  %v8930_v26 = vand.u32 4294901760, %v1583_v13 }
  0x3c   :  { %8078 = vmatmul.mubr.msk.f32.vlgmr.msra.gmra.mxu0 %vm191_vm1, %v8739_v10  ;;  %8081 = vmatpush3.msra.mxu1 %v8767_v46  ;;  %v1240_v46 = vand.u32 4294901760, %v1239_v62  ;;  %v3547_v62 = vsub.f32 %v8909_v20, %v9140_v8 }
  0x3d   :  { %8087 = vmatprep.subr.mxu0 %v8708_v0  ;;  %8082 = vmatprep.subr.mxu1 %v8708_v0  ;;  %v1692_v27 = vsub.f32 %v1583_v13, %v8930_v26  ;;  %v3541_v13 = vand.u32 4294901760, %v3540_v21 }
  0x3e   :  { %8088 = vmatpush3.msra.mxu0 %v8848_v47  ;;  %8083 = vmatpush3.msra.mxu1 %v8773_v49  ;;  %v8935_v49 = vand.u32 4294901760, %v174_v24 }
  0x3f   :  { %8084 = vmatprep.mubr.msk.f32.mxu1 %vm8709_vm0, %v8708_v0  ;;  %8089 = vmatprep.subr.mxu0 %v8708_v0  ;;  %v1693_v29 = vand.u32 4294901760, %v1692_v27  ;;  %v3542_v20 = vsub.f32 %v3540_v21, %v3541_v13 }
  0x40   :  { %8085 = vmatmul.mubr.msk.f32.vlgmr.msra.gmra.mxu1 %vm191_vm1, %v8739_v10  ;;  %8090 = vmatpush3.msra.mxu0 %v8859_v54  ;;  %v1699_v28 = vsub.f32 %v174_v24, %v8935_v49 }
  0x41   :  { %8091 = vmatprep.mubr.msk.f32.mxu0 %vm8709_vm0, %v8708_v0  ;;  %8094 = vmatprep.subr.mxu1 %v8708_v0  ;;  %v1694_v32 = vsub.f32 %v1692_v27, %v1693_v29 }
  0x42   :  { %8092 = vmatmul.mubr.f32.vlgmr.msra.gmra.mxu0 %v8759_v40  ;;  %8095 = vmatpush3.msra.mxu1 %v1233_v23  ;;  %v1700_v30 = vand.u32 4294901760, %v1699_v28  ;;  %v3548_v23 = vand.u32 4294901760, %v3547_v62 }
  0x43   :  { %8101 = vmatprep.subr.mxu0 %v8708_v0  ;;  %8096 = vmatprep.subr.mxu1 %v8708_v0  ;;  %v1695_v25 = vand.u32 4294901760, %v1694_v32 }
  0x44   :  { %8102 = vmatpush3.msra.mxu0 %v8872_v60  ;;  %8097 = vmatpush3.msra.mxu1 %v1240_v46  ;;  %v1701_v34 = vsub.f32 %v1699_v28, %v1700_v30  ;;  %v3549_v24 = vsub.f32 %v3547_v62, %v3548_v23  ;;  %v3543_v46 = vand.u32 4294901760, %v3542_v20 }
  0x45   :  { %8098 = vmatprep.mubr.msk.f32.mxu1 %vm8709_vm0, %v8708_v0  ;;  %8103 = vmatprep.subr.mxu0 %v8708_v0 }
  0x46   :  { %8099 = vmatmul.mubr.msk.f32.vlgmr.msra.gmra.mxu1 %vm191_vm1, %v8739_v10  ;;  %8104 = vmatpush3.msra.mxu0 %v8883_v4  ;;  %v1702_v37 = vand.u32 4294901760, %v1701_v34  ;;  %v9083_v4 = vand.u32 4294901760, %v2969_v36 }
  0x47   :  { %8105 = vmatprep.mubr.msk.f32.mxu0 %vm8709_vm0, %v8708_v0  ;;  %8108 = vmatprep.subr.mxu1 %v8708_v0 }
  0x48   :  { %8106 = vmatmul.mubr.f32.vlgmr.msra.gmra.mxu0 %v8744_v17  ;;  %8109 = vmatpush3.msra.mxu1 %v8848_v47  ;;  %v3078_v6 = vsub.f32 %v2969_v36, %v9083_v4 }
  0x49   :  { %8115 = vmatprep.subr.mxu0 %v8708_v0  ;;  %8110 = vmatprep.subr.mxu1 %v8708_v0 }
  0x4a   :  { %8116 = vmatpush3.msra.mxu0 %v1231_v9  ;;  %8111 = vmatpush3.msra.mxu1 %v8859_v54  ;;  %v3079_v9 = vand.u32 4294901760, %v3078_v6 }
  0x4b   :  { %8112 = vmatprep.mubr.msk.f32.mxu1 %vm8709_vm0, %v8708_v0  ;;  %8117 = vmatprep.subr.mxu0 %v8708_v0 }
  0x4c   :  { %8113 = vmatmul.mubr.f32.vlgmr.msra.gmra.mxu1 %v8748_v22  ;;  %8118 = vmatpush3.msra.mxu0 %v1238_v16  ;;  %v3080_v15 = vsub.f32 %v3078_v6, %v3079_v9  ;;  %v3087_v16 = vsub.f32 %v3085_v7, %v3086_v11 }
  0x4d   :  { %8119 = vmatprep.mubr.msk.f32.mxu0 %vm8709_vm0, %v8708_v0  ;;  %8122 = vmatprep.subr.mxu1 %v8708_v0 }
  0x4e   :  { %8120 = vmatmul.mubr.msk.f32.vlgmr.msra.gmra.mxu0 %vm191_vm1, %v8739_v10  ;;  %8123 = vmatpush3.msra.mxu1 %v8848_v47  ;;  %v2156_v47 = vsub.f32 %v2154_v42, %v2155_v44  ;;  %v3081_v14 = vand.u32 4294901760, %v3080_v15  ;;  %v3088_v18 = vand.u32 4294901760, %v3087_v16 }
  0x4f   :  { %8129 = vmatprep.subr.mxu0 %v8708_v0  ;;  %8124 = vmatprep.subr.mxu1 %v8708_v0 }
  0x50   :  { %8130 = vmatpush3.msra.mxu0 %v8930_v26  ;;  %8125 = vmatpush3.msra.mxu1 %v8859_v54  ;;  %v2157_v33 = vand.u32 4294901760, %v2156_v47  ;;  %v2616_v54 = vsub.f32 %v2507_v19, %v9032_v52 }
  0x51   :  { %8126 = vmatprep.mubr.msk.f32.mxu1 %vm8709_vm0, %v8708_v0  ;;  %8131 = vmatprep.subr.mxu0 %v8708_v0 }
  0x52   :  { %8127 = vmatmul.mubr.msk.f32.vlgmr.msra.gmra.mxu1 %vm191_vm1, %v8739_v10  ;;  %8132 = vmatpush3.msra.mxu0 %v8935_v49  ;;  %v2617_v57 = vand.u32 4294901760, %v2616_v54 }
  0x53   :  { %8133 = vmatprep.mubr.msk.f32.mxu0 %vm8709_vm0, %v8708_v0  ;;  %8136 = vmatprep.subr.mxu1 %v8708_v0 }
  0x54   :  { %8134 = vmatmul.mubr.f32.vlgmr.msra.gmra.mxu0 %v8759_v40  ;;  %8137 = vmatpush3.msra.mxu1 %v1695_v25  ;;  %v2618_v60 = vsub.f32 %v2616_v54, %v2617_v57 }
  0x55   :  { %8143 = vmatprep.subr.mxu0 %v8708_v0  ;;  %8138 = vmatprep.subr.mxu1 %v8708_v0 }
  0x56   :  { %8144 = vmatpush3.msra.mxu0 %v1692_v27  ;;  %8139 = vmatpush3.msra.mxu1 %v1702_v37  ;;  %v2619_v50 = vand.u32 4294901760, %v2618_v60 }
  0x57   :  { %8140 = vmatprep.mubr.msk.f32.mxu1 %vm8709_vm0, %v8708_v0  ;;  %8145 = vmatprep.subr.mxu0 %v8708_v0 }
  0x58   :  { %8141 = vmatmul.mubr.msk.f32.vlgmr.msra.gmra.mxu1 %vm191_vm1, %v8739_v10  ;;  %8146 = vmatpush3.msra.mxu0 %v1699_v28 }
  0x59   :  { %8147 = vmatprep.mubr.msk.f32.mxu0 %vm8709_vm0, %v8708_v0  ;;  %8150 = vmatprep.subr.mxu1 %v8708_v0 }
  0x5a   :  { %8148 = vmatmul.mubr.f32.vlgmr.msra.gmra.mxu0 %v8744_v17  ;;  %8151 = vmatpush3.msra.mxu1 %v8930_v26 }
  0x5b   :  { %8157 = vmatprep.subr.mxu0 %v8708_v0  ;;  %8152 = vmatprep.subr.mxu1 %v8708_v0 }
  0x5c   :  { %8158 = vmatpush3.msra.mxu0 %v1693_v29  ;;  %8153 = vmatpush3.msra.mxu1 %v8935_v49 }
  0x5d   :  { %8154 = vmatprep.mubr.msk.f32.mxu1 %vm8709_vm0, %v8708_v0  ;;  %8159 = vmatprep.subr.mxu0 %v8708_v0 }
  0x5e   :  { %8155 = vmatmul.mubr.f32.vlgmr.msra.gmra.mxu1 %v8748_v22  ;;  %8160 = vmatpush3.msra.mxu0 %v1700_v30 }
  0x5f   :  { %8161 = vmatprep.mubr.msk.f32.mxu0 %vm8709_vm0, %v8708_v0  ;;  %8164 = vmatprep.subr.mxu1 %v8708_v0 }
  0x60   :  { %8162 = vmatmul.mubr.msk.f32.vlgmr.msra.gmra.mxu0 %vm191_vm1, %v8739_v10  ;;  %8165 = vmatpush3.msra.mxu1 %v8930_v26  ;;  %v3550_v26 = vand.u32 4294901760, %v3549_v24 }
  0x61   :  { %8171 = vmatprep.subr.mxu0 %v8708_v0  ;;  %8166 = vmatprep.subr.mxu1 %v8708_v0 }
  0x62   :  { %8172 = vmatpush3.msra.mxu0 %v8981_v38  ;;  %8167 = vmatpush3.msra.mxu1 %v8935_v49 }
  0x63   :  { %8168 = vmatprep.mubr.msk.f32.mxu1 %vm8709_vm0, %v8708_v0  ;;  %8173 = vmatprep.subr.mxu0 %v8708_v0 }
  0x64   :  { %8169 = vmatmul.mubr.msk.f32.vlgmr.msra.gmra.mxu1 %vm191_vm1, %v8739_v10  ;;  %8174 = vmatpush3.msra.mxu0 %v8987_v35 }
  0x65   :  { %8175 = vmatprep.mubr.msk.f32.mxu0 %vm8709_vm0, %v8708_v0  ;;  %8178 = vmatprep.subr.mxu1 %v8708_v0 }
  0x66   :  { %8176 = vmatmul.mubr.f32.vlgmr.msra.gmra.mxu0 %v8759_v40  ;;  %8179 = vmatpush3.msra.mxu1 %v2157_v33 }
  0x67   :  { %8185 = vmatprep.subr.mxu0 %v8708_v0  ;;  %8180 = vmatprep.subr.mxu1 %v8708_v0 }
  0x68   :  { %8186 = vmatpush3.msra.mxu0 %v2154_v42  ;;  %8181 = vmatpush3.msra.mxu1 %v2164_v51 }
  0x69   :  { %8182 = vmatprep.mubr.msk.f32.mxu1 %vm8709_vm0, %v8708_v0  ;;  %8187 = vmatprep.subr.mxu0 %v8708_v0 }
  0x6a   :  { %8183 = vmatmul.mubr.msk.f32.vlgmr.msra.gmra.mxu1 %vm191_vm1, %v8739_v10  ;;  %8188 = vmatpush3.msra.mxu0 %v2161_v43 }
  0x6b   :  { %8189 = vmatprep.mubr.msk.f32.mxu0 %vm8709_vm0, %v8708_v0  ;;  %8192 = vmatprep.subr.mxu1 %v8708_v0 }
  0x6c   :  { %8190 = vmatmul.mubr.f32.vlgmr.msra.gmra.mxu0 %v8744_v17  ;;  %8193 = vmatpush3.msra.mxu1 %v8981_v38 }
  0x6d   :  { %8199 = vmatprep.subr.mxu0 %v8708_v0  ;;  %8194 = vmatprep.subr.mxu1 %v8708_v0 }
  0x6e   :  { %8200 = vmatpush3.msra.mxu0 %v2155_v44  ;;  %8195 = vmatpush3.msra.mxu1 %v8987_v35 }
  0x6f   :  { %8196 = vmatprep.mubr.msk.f32.mxu1 %vm8709_vm0, %v8708_v0  ;;  %8201 = vmatprep.subr.mxu0 %v8708_v0 }
  0x70   :  { %8197 = vmatmul.mubr.f32.vlgmr.msra.gmra.mxu1 %v8748_v22  ;;  %8202 = vmatpush3.msra.mxu0 %v2162_v45 }
  0x71   :  { %8203 = vmatprep.mubr.msk.f32.mxu0 %vm8709_vm0, %v8708_v0  ;;  %8206 = vmatprep.subr.mxu1 %v8708_v0 }
  0x72   :  { %8204 = vmatmul.mubr.msk.f32.vlgmr.msra.gmra.mxu0 %vm191_vm1, %v8739_v10  ;;  %8207 = vmatpush3.msra.mxu1 %v8981_v38 }
  0x73   :  { %8213 = vmatprep.subr.mxu0 %v8708_v0  ;;  %8208 = vmatprep.subr.mxu1 %v8708_v0 }
  0x74   :  { %8214 = vmatpush3.msra.mxu0 %v9032_v52  ;;  %8209 = vmatpush3.msra.mxu1 %v8987_v35 }
  0x75   :  { %8210 = vmatprep.mubr.msk.f32.mxu1 %vm8709_vm0, %v8708_v0  ;;  %8215 = vmatprep.subr.mxu0 %v8708_v0 }
  0x76   :  { %8211 = vmatmul.mubr.msk.f32.vlgmr.msra.gmra.mxu1 %vm191_vm1, %v8739_v10  ;;  %8216 = vmatpush3.msra.mxu0 %v9038_v53 }
  0x77   :  { %8217 = vmatprep.mubr.msk.f32.mxu0 %vm8709_vm0, %v8708_v0  ;;  %8220 = vmatprep.subr.mxu1 %v8708_v0 }
  0x78   :  { %8218 = vmatmul.mubr.f32.vlgmr.msra.gmra.mxu0 %v8759_v40  ;;  %8221 = vmatpush3.msra.mxu1 %v2619_v50 }
  0x79   :  { %8227 = vmatprep.subr.mxu0 %v8708_v0  ;;  %8222 = vmatprep.subr.mxu1 %v8708_v0 }
  0x7a   :  { %8228 = vmatpush3.msra.mxu0 %v2616_v54  ;;  %8223 = vmatpush3.msra.mxu1 %v2626_v63 }
  0x7b   :  { %8224 = vmatprep.mubr.msk.f32.mxu1 %vm8709_vm0, %v8708_v0  ;;  %8229 = vmatprep.subr.mxu0 %v8708_v0 }
  0x7c   :  { %8225 = vmatmul.mubr.msk.f32.vlgmr.msra.gmra.mxu1 %vm191_vm1, %v8739_v10  ;;  %8230 = vmatpush3.msra.mxu0 %v2623_v55 }
  0x7d   :  { %8231 = vmatprep.mubr.msk.f32.mxu0 %vm8709_vm0, %v8708_v0  ;;  %8234 = vmatprep.subr.mxu1 %v8708_v0 }
  0x7e   :  { %8232 = vmatmul.mubr.f32.vlgmr.msra.gmra.mxu0 %v8744_v17  ;;  %8235 = vmatpush3.msra.mxu1 %v9032_v52 }
  0x7f   :  { %8241 = vmatprep.subr.mxu0 %v8708_v0  ;;  %8236 = vmatprep.subr.mxu1 %v8708_v0 }
  0x80   :  { %8242 = vmatpush3.msra.mxu0 %v2617_v57  ;;  %8237 = vmatpush3.msra.mxu1 %v9038_v53 }
  0x81   :  { %8238 = vmatprep.mubr.msk.f32.mxu1 %vm8709_vm0, %v8708_v0  ;;  %8243 = vmatprep.subr.mxu0 %v8708_v0 }
  0x82   :  { %8239 = vmatmul.mubr.f32.vlgmr.msra.gmra.mxu1 %v8748_v22  ;;  %8244 = vmatpush3.msra.mxu0 %v2624_v58 }
  0x83   :  { %8245 = vmatprep.mubr.msk.f32.mxu0 %vm8709_vm0, %v8708_v0  ;;  %8248 = vmatprep.subr.mxu1 %v8708_v0 }
  0x84   :  { %8246 = vmatmul.mubr.msk.f32.vlgmr.msra.gmra.mxu0 %vm191_vm1, %v8739_v10  ;;  %8249 = vmatpush3.msra.mxu1 %v9032_v52 }
  0x85   :  { %8255 = vmatprep.subr.mxu0 %v8708_v0  ;;  %8250 = vmatprep.subr.mxu1 %v8708_v0 }
  0x86   :  { %8256 = vmatpush3.msra.mxu0 %v9083_v4  ;;  %8251 = vmatpush3.msra.mxu1 %v9038_v53 }
  0x87   :  { %8252 = vmatprep.mubr.msk.f32.mxu1 %vm8709_vm0, %v8708_v0  ;;  %8257 = vmatprep.subr.mxu0 %v8708_v0 }
  0x88   :  { %8253 = vmatmul.mubr.msk.f32.vlgmr.msra.gmra.mxu1 %vm191_vm1, %v8739_v10  ;;  %8258 = vmatpush3.msra.mxu0 %v9089_v5 }
  0x89   :  { %8259 = vmatprep.mubr.msk.f32.mxu0 %vm8709_vm0, %v8708_v0  ;;  %8262 = vmatprep.subr.mxu1 %v8708_v0 }
  0x8a   :  { %8260 = vmatmul.mubr.f32.vlgmr.msra.gmra.mxu0 %v8759_v40  ;;  %8263 = vmatpush3.msra.mxu1 %v3081_v14 }
  0x8b   :  { %8269 = vmatprep.subr.mxu0 %v8708_v0  ;;  %8264 = vmatprep.subr.mxu1 %v8708_v0 }
  0x8c   :  { %8270 = vmatpush3.msra.mxu0 %v3078_v6  ;;  %8265 = vmatpush3.msra.mxu1 %v3088_v18 }
  0x8d   :  { %8266 = vmatprep.mubr.msk.f32.mxu1 %vm8709_vm0, %v8708_v0  ;;  %8271 = vmatprep.subr.mxu0 %v8708_v0 }
  0x8e   :  { %8267 = vmatmul.mubr.msk.f32.vlgmr.msra.gmra.mxu1 %vm191_vm1, %v8739_v10  ;;  %8272 = vmatpush3.msra.mxu0 %v3085_v7 }
  0x8f   :  { %8273 = vmatprep.mubr.msk.f32.mxu0 %vm8709_vm0, %v8708_v0  ;;  %8276 = vmatprep.subr.mxu1 %v8708_v0 }
  0x90   :  { %8274 = vmatmul.mubr.f32.vlgmr.msra.gmra.mxu0 %v8744_v17  ;;  %8277 = vmatpush3.msra.mxu1 %v9083_v4 }
  0x91   :  { %8283 = vmatprep.subr.mxu0 %v8708_v0  ;;  %8278 = vmatprep.subr.mxu1 %v8708_v0 }
  0x92   :  { %8284 = vmatpush3.msra.mxu0 %v3079_v9  ;;  %8279 = vmatpush3.msra.mxu1 %v9089_v5 }
  0x93   :  { %8280 = vmatprep.mubr.msk.f32.mxu1 %vm8709_vm0, %v8708_v0  ;;  %8285 = vmatprep.subr.mxu0 %v8708_v0 }
  0x94   :  { %8281 = vmatmul.mubr.f32.vlgmr.msra.gmra.mxu1 %v8748_v22  ;;  %8286 = vmatpush3.msra.mxu0 %v3086_v11 }
  0x95   :  { %8287 = vmatprep.mubr.msk.f32.mxu0 %vm8709_vm0, %v8708_v0  ;;  %8290 = vmatprep.subr.mxu1 %v8708_v0 }
  0x96   :  { %8288 = vmatmul.mubr.msk.f32.vlgmr.msra.gmra.mxu0 %vm191_vm1, %v8739_v10  ;;  %8291 = vmatpush3.msra.mxu1 %v9083_v4 }
  0x97   :  { %8297 = vmatprep.subr.mxu0 %v8708_v0  ;;  %8292 = vmatprep.subr.mxu1 %v8708_v0 }
  0x98   :  { %8298 = vmatpush3.msra.mxu0 %v9134_v56  ;;  %8293 = vmatpush3.msra.mxu1 %v9089_v5 }
  0x99   :  { %8294 = vmatprep.mubr.msk.f32.mxu1 %vm8709_vm0, %v8708_v0  ;;  %8299 = vmatprep.subr.mxu0 %v8708_v0 }
  0x9a   :  { %8295 = vmatmul.mubr.msk.f32.vlgmr.msra.gmra.mxu1 %vm191_vm1, %v8739_v10  ;;  %8300 = vmatpush3.msra.mxu0 %v9140_v8 }
  0x9b   :  { %8301 = vmatprep.mubr.msk.f32.mxu0 %vm8709_vm0, %v8708_v0  ;;  %8304 = vmatprep.subr.mxu1 %v8708_v0 }
  0x9c   :  { %8302 = vmatmul.mubr.f32.vlgmr.msra.gmra.mxu0 %v8759_v40  ;;  %8305 = vmatpush3.msra.mxu1 %v3543_v46 }
  0x9d   :  { %8311 = vmatprep.subr.mxu0 %v8708_v0  ;;  %8306 = vmatprep.subr.mxu1 %v8708_v0 }
  0x9e   :  { %8312 = vmatpush3.msra.mxu0 %v3540_v21  ;;  %8307 = vmatpush3.msra.mxu1 %v3550_v26 }
  0x9f   :  { %8308 = vmatprep.mubr.msk.f32.mxu1 %vm8709_vm0, %v8708_v0  ;;  %8313 = vmatprep.subr.mxu0 %v8708_v0 }
  0xa0   :  { %8309 = vmatmul.mubr.msk.f32.vlgmr.msra.gmra.mxu1 %vm191_vm1, %v8739_v10  ;;  %8314 = vmatpush3.msra.mxu0 %v3547_v62 }
  0xa1   :  { %8315 = vmatprep.mubr.msk.f32.mxu0 %vm8709_vm0, %v8708_v0  ;;  %8318 = vmatprep.subr.mxu1 %v8708_v0 }
  0xa2   :  { %8316 = vmatmul.mubr.f32.vlgmr.msra.gmra.mxu0 %v8744_v17  ;;  %8319 = vmatpush3.msra.mxu1 %v9134_v56 }
  0xa3   :  { %8325 = vmatprep.subr.mxu0 %v8708_v0  ;;  %8320 = vmatprep.subr.mxu1 %v8708_v0 }
  0xa4   :  { %8326 = vmatpush3.msra.mxu0 %v3541_v13  ;;  %8321 = vmatpush3.msra.mxu1 %v9140_v8 }
  0xa5   :  { %8322 = vmatprep.mubr.msk.f32.mxu1 %vm8709_vm0, %v8708_v0  ;;  %8327 = vmatprep.subr.mxu0 %v8708_v0 }
  0xa6   :  { %8323 = vmatmul.mubr.f32.vlgmr.msra.gmra.mxu1 %v8748_v22  ;;  %8328 = vmatpush3.msra.mxu0 %v3548_v23 }
  0xa7   :  { %8329 = vmatprep.mubr.msk.f32.mxu0 %vm8709_vm0, %v8708_v0  ;;  %8332 = vmatprep.subr.mxu1 %v8708_v0 }
  0xa8   :  { %8330 = vmatmul.mubr.msk.f32.vlgmr.msra.gmra.mxu0 %vm191_vm1, %v8739_v10  ;;  %8333 = vmatpush3.msra.mxu1 %v9134_v56 }
  0xa9   :  { %8336 = vmatprep.mubr.msk.f32.mxu1 %vm8709_vm0, %v8708_v0  ;;  %8334 = vmatprep.subr.mxu1 %v8708_v0 }
  0xaa   :  { %8339 = vmatprep.subr.mxu0 %v8708_v0  ;;  %8335 = vmatpush3.msra.mxu1 %v9140_v8 }
  0xab   :  { %8343 = vmatprep.mubr.msk.f32.mxu0 %vm8709_vm0, %v8708_v0  ;;  %8337 = vmatmul.mubr.msk.f32.vlgmr.msra.gmra.mxu1 %vm191_vm1, %v8739_v10 }
  0xac   :  { %8346 = vmatprep.subr.mxu1 %v8708_v0  ;;  %8350 = vmatprep.mubr.msk.f32.mxu1 %vm8709_vm0, %v8708_v0 }
  0xde   :  { %v272_v17 = vpop.f32.mrf.mxu0 }
  0xe0   :  { %v8009_v22 = vpop.f32.mrf.mxu0 }
  0xe2   :  { %v429_v40 = vpop.f32.mrf.mxu0 }
  0xe4   :  { %v8023_v49 = vpop.f32.mrf.mxu0 }
  0xe5   :  { %v353_v27 = vpop.f32.mrf.mxu1 }
  0xe6   :  { %v354_v28 = vadd.f32 %v353_v27, %v272_v17 }
  0xe7   :  { %v8016_v29 = vpop.f32.mrf.mxu1 }
  0xe8   :  { %v430_v30 = vadd.f32 %v429_v40, %v354_v28  ;;  %v581_v31 = vpop.f32.mrf.mxu0 }
  0xea   :  { %v504_v32 = vpop.f32.mrf.mxu1  ;;  %v8037_v12 = vpop.f32.mrf.mxu0 }
  0xeb   :  { %v505_v34 = vadd.f32 %v504_v32, %v430_v30 }
  0xec   :  { %v8030_v25 = vpop.f32.mrf.mxu1 }
  0xed   :  { %v582_v37 = vadd.f32 %v581_v31, %v505_v34 }
  0xee   :  { %v654_v10 = vpop.f32.mrf.mxu1 }
  0xef   :  { %v9220_v38 = vadd.f32 %v654_v10, %v582_v37 }
  0xf0   :  { %v734_v35 = vpop.f32.mrf.mxu0  ;;  %v8044_v42 = vpop.f32.mrf.mxu1 }
  0xf1   :  { %3900 = vrot.lane.b32.xlu0 %v9220_v38, %s8710_s0 }
  0xf2   :  { %v8051_v43 = vpop.f32.mrf.mxu0 }
  0xf4   :  { %v815_v44 = vpop.f32.mrf.mxu1 }
  0xf5   :  { %v816_v45 = vadd.f32 %v815_v44, %v734_v35 }
  0xf6   :  { %v891_v41 = vpop.f32.mrf.mxu0  ;;  %v8058_v47 = vpop.f32.mrf.mxu1 }
  0xf7   :  { %v892_v39 = vadd.f32 %v891_v41, %v816_v45 }
  0xf8   :  { %v8065_v19 = vpop.f32.mrf.mxu0 }
  0xfa   :  { %v966_v33 = vpop.f32.mrf.mxu1 }
  0xfb   :  { %v967_v51 = vadd.f32 %v966_v33, %v892_v39 }
  0xfc   :  { %v1043_v52 = vpop.f32.mrf.mxu0  ;;  %v8072_v53 = vpop.f32.mrf.mxu1 }
  0xfd   :  { %v1044_v54 = vadd.f32 %v1043_v52, %v967_v51 }
  0xfe   :  { %v8079_v55 = vpop.f32.mrf.mxu0 }
 0x100   :  { %v1116_v57 = vpop.f32.mrf.mxu1 }
 0x101   :  { %v9224_v58 = vadd.f32 %v1116_v57, %v1044_v54 }
 0x102   :  { %v1196_v48 = vpop.f32.mrf.mxu0  ;;  %v8086_v60 = vpop.f32.mrf.mxu1 }
 0x103   :  { %3902 = vrot.lane.b32.xlu0 %v9224_v58, %s8710_s0 }
 0x104   :  { %v8093_v61 = vpop.f32.mrf.mxu0 }
 0x106   :  { %v1277_v36 = vpop.f32.mrf.mxu1 }
 0x107   :  { %v1278_v50 = vadd.f32 %v1277_v36, %v1196_v48 }
 0x108   :  { %v1353_v63 = vpop.f32.mrf.mxu0  ;;  %v8100_v4 = vpop.f32.mrf.mxu1 }
 0x109   :  { %v1354_v5 = vadd.f32 %v1353_v63, %v1278_v50 }
 0x10a   :  { %v8107_v6 = vpop.f32.mrf.mxu0 }
 0x10c   :  { %v1428_v7 = vpop.f32.mrf.mxu1 }
 0x10d   :  { %v1429_v9 = vadd.f32 %v1428_v7, %v1354_v5 }
 0x10e   :  { %v1505_v11 = vpop.f32.mrf.mxu0  ;;  %v8114_v59 = vpop.f32.mrf.mxu1 }
 0x10f   :  { %v1506_v15 = vadd.f32 %v1505_v11, %v1429_v9 }
 0x110   :  { %v8121_v16 = vpop.f32.mrf.mxu0 }
 0x112   :  { %v1578_v1 = vpop.f32.mrf.mxu1 }
 0x113   :  { %v9228_v14 = vadd.f32 %v1578_v1, %v1506_v15 }
 0x114   :  { %v1658_v18 = vpop.f32.mrf.mxu0  ;;  %v8128_v56 = vpop.f32.mrf.mxu1 }
 0x115   :  { %3904 = vrot.lane.b32.xlu1 %v9228_v14, %s8710_s0 }
 0x116   :  { %v8135_v8 = vpop.f32.mrf.mxu0 }
 0x118   :  { %v1739_v21 = vpop.f32.mrf.mxu1 }
 0x119   :  { %v1740_v62 = vadd.f32 %v1739_v21, %v1658_v18 }
 0x11a   :  { %v1815_v13 = vpop.f32.mrf.mxu0  ;;  %v8142_v23 = vpop.f32.mrf.mxu1 }
 0x11b   :  { %v1816_v20 = vadd.f32 %v1815_v13, %v1740_v62 }
 0x11c   :  { %v8149_v24 = vpop.f32.mrf.mxu0 }
 0x11e   :  { %v1890_v46 = vpop.f32.mrf.mxu1 }
 0x11f   :  { %v1891_v26 = vadd.f32 %v1890_v46, %v1816_v20 }
 0x120   :  { %v1967_v17 = vpop.f32.mrf.mxu0  ;;  %v8156_v22 = vpop.f32.mrf.mxu1 }
 0x121   :  { %v1968_v40 = vadd.f32 %v1967_v17, %v1891_v26 }
 0x122   :  { %v8163_v49 = vpop.f32.mrf.mxu0 }
 0x124   :  { %v2040_v27 = vpop.f32.mrf.mxu1 }
 0x125   :  { %v9232_v28 = vadd.f32 %v2040_v27, %v1968_v40 }
 0x126   :  { %v2120_v29 = vpop.f32.mrf.mxu0  ;;  %v8170_v30 = vpop.f32.mrf.mxu1 }
 0x127   :  { %3906 = vrot.lane.b32.xlu1 %v9232_v28, %s8710_s0 }
 0x128   :  { %v8177_v31 = vpop.f32.mrf.mxu0 }
 0x12a   :  { %v2201_v32 = vpop.f32.mrf.mxu1 }
 0x12b   :  { %v2202_v34 = vadd.f32 %v2201_v32, %v2120_v29 }
 0x12c   :  { %v2277_v12 = vpop.f32.mrf.mxu0  ;;  %v8184_v25 = vpop.f32.mrf.mxu1 }
 0x12d   :  { %v2278_v37 = vadd.f32 %v2277_v12, %v2202_v34  ;;  %v3972_v12 = vadd.s32 8, %v8732_v2  ;;  %v3973_v25 = vmul.u32 2, %v8734_v3 }
 0x12e   :  { %v8191_v10 = vpop.f32.mrf.mxu0 }
 0x12f   :  { %vm3975_vm6 = vcmp.eq.s32.totalorder %v3972_v12, %v3973_v25  ;;  %vm9253_vm7 = vcmp.eq.s32.totalorder %v8732_v2, %v3973_v25 }
 0x130   :  { %v2352_v35 = vpop.f32.mrf.mxu1 }
 0x131   :  { %v2353_v42 = vadd.f32 %v2352_v35, %v2278_v37 }
 0x132   :  { %v2429_v43 = vpop.f32.mrf.mxu0  ;;  %v8198_v44 = vpop.f32.mrf.mxu1 }
 0x133   :  { %v2430_v45 = vadd.f32 %v2429_v43, %v2353_v42  ;;  %v9258_v42 = vsel %vm3975_vm6, 1.0, %v8708_v0 }
 0x134   :  { %v8205_v41 = vpop.f32.mrf.mxu0  ;;  %v3982_v44 = vsel %vm195_vm5, %v9258_v42, 0  ;;  %8340 = vmatpush3.msk.msra.mxu0 %vm195_vm5, %v9258_v42 }
 0x135   :  { %v9269_v41 = vsub.f32 %v3982_v44, %v3982_v44  ;;  %8341 = vmatprep.subr.mxu0 %v8708_v0 }
 0x136   :  { %v2502_v47 = vpop.f32.mrf.mxu1 }
 0x137   :  { %v9236_v39 = vadd.f32 %v2502_v47, %v2430_v45 }
 0x138   :  { %v2582_v19 = vpop.f32.mrf.mxu0  ;;  %v8212_v33 = vpop.f32.mrf.mxu1 }
 0x139   :  { %3908 = vrot.lane.b32.xlu0 %v9236_v39, %s8710_s0  ;;  %v8712_v33 = vmov 1.0  }
 0x13a   :  { %v8219_v51 = vpop.f32.mrf.mxu0  ;;  %8342 = vmatpush3.msk.msra.mxu0 %vm9253_vm7, %v8712_v33 }
 0x13b   :  { %v9279_v51 = vand.u32 4294901760, %v9269_v41  ;;  %8353 = vmatprep.subr.mxu0 %v8708_v0 }
 0x13c   :  { %v2663_v52 = vpop.f32.mrf.mxu1 }
 0x13d   :  { %v2664_v53 = vadd.f32 %v2663_v52, %v2582_v19 }
 0x13e   :  { %v2739_v54 = vpop.f32.mrf.mxu0  ;;  %v8226_v55 = vpop.f32.mrf.mxu1 }
 0x13f   :  { %v2740_v57 = vadd.f32 %v2739_v54, %v2664_v53  ;;  %v4092_v55 = vsub.f32 %v9269_v41, %v9279_v51 }
 0x140   :  { %v8233_v48 = vpop.f32.mrf.mxu0 }
 0x141   :  { %v9287_v48 = vand.u32 4294901760, %v4092_v55 }
 0x142   :  { %v2814_v60 = vpop.f32.mrf.mxu1 }
 0x143   :  { %v2815_v61 = vadd.f32 %v2814_v60, %v2740_v57  ;;  %8347 = vmatpush3.msra.mxu1 %v9287_v48 }
 0x144   :  { %v2891_v36 = vpop.f32.mrf.mxu0  ;;  %v8240_v50 = vpop.f32.mrf.mxu1  ;;  %8348 = vmatprep.subr.mxu1 %v8708_v0 }
 0x145   :  { %v2892_v63 = vadd.f32 %v2891_v36, %v2815_v61 }
 0x146   :  { %v8247_v4 = vpop.f32.mrf.mxu0 }
 0x148   :  { %v2964_v5 = vpop.f32.mrf.mxu1 }
 0x149   :  { %v9240_v6 = vadd.f32 %v2964_v5, %v2892_v63 }
 0x14a   :  { %v3044_v7 = vpop.f32.mrf.mxu0  ;;  %v8254_v9 = vpop.f32.mrf.mxu1 }
 0x14b   :  { %3910 = vrot.lane.b32.xlu1 %v9240_v6, %s8710_s0 }
 0x14c   :  { %v8261_v11 = vpop.f32.mrf.mxu0 }
 0x14e   :  { %v3125_v59 = vpop.f32.mrf.mxu1 }
 0x14f   :  { %v3126_v15 = vadd.f32 %v3125_v59, %v3044_v7 }
 0x150   :  { %v3201_v16 = vpop.f32.mrf.mxu0  ;;  %v8268_v1 = vpop.f32.mrf.mxu1 }
 0x151   :  { %v3202_v18 = vadd.f32 %v3201_v16, %v3126_v15 }
 0x152   :  { %v8275_v56 = vpop.f32.mrf.mxu0 }
 0x154   :  { %v3276_v8 = vpop.f32.mrf.mxu1 }
 0x155   :  { %v3277_v21 = vadd.f32 %v3276_v8, %v3202_v18 }
 0x156   :  { %v3353_v62 = vpop.f32.mrf.mxu0  ;;  %v8282_v13 = vpop.f32.mrf.mxu1 }
 0x157   :  { %v3354_v23 = vadd.f32 %v3353_v62, %v3277_v21 }
 0x158   :  { %v8289_v20 = vpop.f32.mrf.mxu0 }
 0x15a   :  { %v3426_v24 = vpop.f32.mrf.mxu1 }
 0x15b   :  { %v9244_v46 = vadd.f32 %v3426_v24, %v3354_v23 }
 0x15c   :  { %v3506_v26 = vpop.f32.mrf.mxu0  ;;  %v8296_v17 = vpop.f32.mrf.mxu1 }
 0x15d   :  { %3912 = vrot.lane.b32.xlu1 %v9244_v46, %s8710_s0 }
 0x15e   :  { %v8303_v22 = vpop.f32.mrf.mxu0 }
 0x160   :  { %v3587_v40 = vpop.f32.mrf.mxu1 }
 0x161   :  { %v3588_v49 = vadd.f32 %v3587_v40, %v3506_v26 }
 0x162   :  { %v3663_v27 = vpop.f32.mrf.mxu0  ;;  %v8310_v29 = vpop.f32.mrf.mxu1 }
 0x163   :  { %v3664_v30 = vadd.f32 %v3663_v27, %v3588_v49  ;;  %v3901_v31 = vpop.permute.xlu0 %3900 }
 0x164   :  { %v8317_v32 = vpop.f32.mrf.mxu0  ;;  %v3924_v34 = vmax.f32 %v9220_v38, %v3901_v31  ;;  %v3976_v38 = vsel %vm9253_vm7, 1.0, %v8708_v0 }
 0x165   :  { %v9265_v45 = vsub.f32 %v3976_v38, %v3976_v38 }
 0x166   :  { %v3738_v37 = vpop.f32.mrf.mxu1  ;;  %3940 = vrot.lane.b32.xlu0 %v3924_v34, %s8711_s13 }
 0x167   :  { %v3739_v35 = vadd.f32 %v3738_v37, %v3664_v30  ;;  %v9273_v19 = vand.u32 4294901760, %v9265_v45 }
 0x168   :  { %v3815_v43 = vpop.f32.mrf.mxu0  ;;  %v8324_v3 = vpop.f32.mrf.mxu1 }
 0x169   :  { %v3816_v2 = vadd.f32 %v3815_v43, %v3739_v35  ;;  %v4098_v53 = vsub.f32 %v9265_v45, %v9273_v19 }
 0x16a   :  { %v8331_v47 = vpop.f32.mrf.mxu0 }
 0x16b   :  { %v3888_v52 = vpop.f32.mrf.mxu1  ;;  %v9289_v60 = vand.u32 4294901760, %v4098_v53 }
 0x16c   :  { %v3889_v54 = vadd.f32 %v3888_v52, %v3816_v2 }
 0x16d   :  { %v8338_v57 = vpop.f32.mrf.mxu1  ;;  %8349 = vmatpush3.msra.mxu1 %v9289_v60 }
 0x16e   :  { %3914 = vrot.lane.b32.xlu1 %v3889_v54, %s8710_s0  ;;  %8360 = vmatprep.subr.mxu1 %v8708_v0 }
 0x175   :  { %v3903_v61 = vpop.permute.xlu0 %3902 }
 0x176   :  { %v3925_v36 = vmax.f32 %v9224_v58, %v3903_v61 }
 0x178   :  { %3942 = vrot.lane.b32.xlu0 %v3925_v36, %s8711_s13 }
 0x187   :  { %v3905_v50 = vpop.permute.xlu1 %3904 }
 0x188   :  { %v9298_v63 = vmax.f32 %v9228_v14, %v3905_v50 }
 0x18a   :  { %3944 = vrot.lane.b32.xlu0 %v9298_v63, %s8711_s13 }
 0x199   :  { %v3907_v4 = vpop.permute.xlu1 %3906 }
 0x19a   :  { %v9303_v5 = vmax.f32 %v9232_v28, %v3907_v4 }
 0x19c   :  { %3946 = vrot.lane.b32.xlu1 %v9303_v5, %s8711_s13 }
 0x1ab   :  { %v3909_v7 = vpop.permute.xlu0 %3908 }
 0x1ac   :  { %v9308_v9 = vmax.f32 %v9236_v39, %v3909_v7 }
 0x1ae   :  { %3948 = vrot.lane.b32.xlu0 %v9308_v9, %s8711_s13 }
 0x1bd   :  { %v3911_v58 = vpop.permute.xlu1 %3910 }
 0x1be   :  { %v9313_v14 = vmax.f32 %v9240_v6, %v3911_v58 }
 0x1c0   :  { %3950 = vrot.lane.b32.xlu1 %v9313_v14, %s8711_s13 }
 0x1cf   :  { %v3913_v11 = vpop.permute.xlu1 %3912 }
 0x1d0   :  { %v9318_v28 = vmax.f32 %v9244_v46, %v3913_v11 }
 0x1d2   :  { %3952 = vrot.lane.b32.xlu0 %v9318_v28, %s8711_s13 }
 0x1d8   :  { %v3941_v59 = vpop.permute.xlu0 %3940 }
 0x1d9   :  { %v3964_v39 = vmax.f32 %v3924_v34, %v3941_v59 }
 0x1db   :  { %v3979_v15 = vsel %vm191_vm1, %v3964_v39, 0 }
 0x1dc   :  { %v4050_v16 = vand.u32 4294901760, %v3979_v15 }
 0x1de   :  { %v4051_v1 = vsub.f32 %v3979_v15, %v4050_v16  ;;  %8351 = vmatmul.mubr.f32.vlgmr.msra.gmra.mxu1 %v4050_v16 }
 0x1df   :  { %8361 = vmatpush3.msk.msra.mxu1 %vm195_vm5, %v9258_v42  ;;  %8364 = vmatprep.mubr.msk.f32.mxu1 %vm8709_vm0, %v8708_v0 }
 0x1e0   :  { %8362 = vmatprep.subr.mxu1 %v8708_v0  ;;  %v4052_v6 = vand.u32 4294901760, %v4051_v1  ;;  %v3915_v18 = vpop.permute.xlu1 %3914 }
 0x1e1   :  { %8363 = vmatpush3.msk.msra.mxu1 %vm9253_vm7, %v8712_v33  ;;  %v9331_v56 = vmax.f32 %v3889_v54, %v3915_v18 }
 0x1e2   :  { %8365 = vmatmul.mubr.f32.vlgmr.msra.gmra.mxu1 %v4052_v6  ;;  %8374 = vmatprep.subr.mxu1 %v8708_v0  ;;  %v4053_v8 = vsub.f32 %v4051_v1, %v4052_v6 }
 0x1e3   :  { %8375 = vmatpush3.msk.msra.mxu1 %vm195_vm5, %v9258_v42  ;;  %8378 = vmatprep.mubr.msk.f32.mxu1 %vm8709_vm0, %v8708_v0 }
 0x1e4   :  { %3954 = vrot.lane.b32.xlu1 %v9331_v56, %s8711_s13  ;;  %8376 = vmatprep.subr.mxu1 %v8708_v0  ;;  %v4054_v21 = vand.u32 4294901760, %v4053_v8 }
 0x1e5   :  { %8377 = vmatpush3.msk.msra.mxu1 %vm9253_vm7, %v8712_v33 }
 0x1e6   :  { %8344 = vmatmul.mubr.f32.vlgmr.msra.gmra.mxu0 %v4054_v21  ;;  %8379 = vmatmul.mubr.f32.vlgmr.msra.gmra.mxu1 %v4050_v16 }
 0x1e7   :  { %8388 = vmatprep.subr.mxu1 %v8708_v0  ;;  %8354 = vmatpush3.msra.mxu0 %v9269_v41 }
 0x1e8   :  { %8389 = vmatpush3.msra.mxu1 %v9287_v48  ;;  %8355 = vmatprep.subr.mxu0 %v8708_v0 }
 0x1e9   :  { %8390 = vmatprep.subr.mxu1 %v8708_v0  ;;  %8356 = vmatpush3.msra.mxu0 %v9265_v45 }
 0x1ea   :  { %v3943_v62 = vpop.permute.xlu0 %3942  ;;  %8357 = vmatprep.mubr.msk.f32.mxu0 %vm8709_vm0, %v8708_v0  ;;  %8391 = vmatpush3.msra.mxu1 %v9289_v60 }
 0x1eb   :  { %v3965_v13 = vmax.f32 %v3925_v36, %v3943_v62  ;;  %8392 = vmatprep.mubr.msk.f32.mxu1 %vm8709_vm0, %v8708_v0  ;;  %8358 = vmatmul.mubr.f32.vlgmr.msra.gmra.mxu0 %v4051_v1 }
 0x1ec   :  { %8367 = vmatprep.subr.mxu0 %v8708_v0  ;;  %8402 = vmatprep.subr.mxu1 %v8708_v0 }
 0x1ed   :  { %v4438_v23 = vsel %vm191_vm1, %v3965_v13, 0  ;;  %8368 = vmatpush3.msra.mxu0 %v9279_v51  ;;  %8371 = vmatprep.mubr.msk.f32.mxu0 %vm8709_vm0, %v8708_v0 }
 0x1ee   :  { %v4506_v20 = vand.u32 4294901760, %v4438_v23  ;;  %8369 = vmatprep.subr.mxu0 %v8708_v0 }
 0x1ef   :  { %8370 = vmatpush3.msra.mxu0 %v9273_v19 }
 0x1f0   :  { %v4507_v24 = vsub.f32 %v4438_v23, %v4506_v20  ;;  %8393 = vmatmul.mubr.f32.vlgmr.msra.gmra.mxu1 %v4506_v20  ;;  %8372 = vmatmul.mubr.f32.vlgmr.msra.gmra.mxu0 %v4050_v16 }
 0x1f1   :  { %8403 = vmatpush3.msk.msra.mxu1 %vm195_vm5, %v9258_v42  ;;  %8406 = vmatprep.mubr.msk.f32.mxu1 %vm8709_vm0, %v8708_v0 }
 0x1f2   :  { %8404 = vmatprep.subr.mxu1 %v8708_v0  ;;  %8381 = vmatprep.subr.mxu0 %v8708_v0  ;;  %v4508_v46 = vand.u32 4294901760, %v4507_v24 }
 0x1f3   :  { %8405 = vmatpush3.msk.msra.mxu1 %vm9253_vm7, %v8712_v33  ;;  %8382 = vmatpush3.msk.msra.mxu0 %vm195_vm5, %v9258_v42 }
 0x1f4   :  { %8407 = vmatmul.mubr.f32.vlgmr.msra.gmra.mxu1 %v4508_v46  ;;  %8416 = vmatprep.subr.mxu1 %v8708_v0  ;;  %v4509_v26 = vsub.f32 %v4507_v24, %v4508_v46 }
 0x1f5   :  { %8417 = vmatpush3.msk.msra.mxu1 %vm195_vm5, %v9258_v42  ;;  %8383 = vmatprep.subr.mxu0 %v8708_v0 }
 0x1f6   :  { %8418 = vmatprep.subr.mxu1 %v8708_v0  ;;  %8384 = vmatpush3.msk.msra.mxu0 %vm9253_vm7, %v8712_v33  ;;  %v4510_v17 = vand.u32 4294901760, %v4509_v26 }
 0x1f7   :  { %8385 = vmatprep.mubr.msk.f32.mxu0 %vm8709_vm0, %v8708_v0  ;;  %8419 = vmatpush3.msk.msra.mxu1 %vm9253_vm7, %v8712_v33 }
 0x1f8   :  { %8420 = vmatprep.mubr.msk.f32.mxu1 %vm8709_vm0, %v8708_v0  ;;  %8386 = vmatmul.mubr.f32.vlgmr.msra.gmra.mxu0 %v4510_v17 }
 0x1f9   :  { %8395 = vmatprep.subr.mxu0 %v8708_v0  ;;  %8421 = vmatmul.mubr.f32.vlgmr.msra.gmra.mxu1 %v4506_v20 }
 0x1fa   :  { %8430 = vmatprep.subr.mxu1 %v8708_v0  ;;  %8396 = vmatpush3.msra.mxu0 %v9269_v41 }
 0x1fb   :  { %8431 = vmatpush3.msra.mxu1 %v9287_v48  ;;  %8397 = vmatprep.subr.mxu0 %v8708_v0 }
 0x1fc   :  { %v3945_v22 = vpop.permute.xlu0 %3944  ;;  %8432 = vmatprep.subr.mxu1 %v8708_v0  ;;  %8398 = vmatpush3.msra.mxu0 %v9265_v45 }
 0x1fd   :  { %v3966_v40 = vmax.f32 %v9298_v63, %v3945_v22  ;;  %8399 = vmatprep.mubr.msk.f32.mxu0 %vm8709_vm0, %v8708_v0  ;;  %8433 = vmatpush3.msra.mxu1 %v9289_v60 }
 0x1fe   :  { %8434 = vmatprep.mubr.msk.f32.mxu1 %vm8709_vm0, %v8708_v0  ;;  %8400 = vmatmul.mubr.f32.vlgmr.msra.gmra.mxu0 %v4507_v24 }
 0x1ff   :  { %v4894_v49 = vsel %vm191_vm1, %v3966_v40, 0  ;;  %8409 = vmatprep.subr.mxu0 %v8708_v0  ;;  %8444 = vmatprep.subr.mxu1 %v8708_v0 }
 0x200   :  { %v4962_v27 = vand.u32 4294901760, %v4894_v49  ;;  %8410 = vmatpush3.msra.mxu0 %v9279_v51  ;;  %8413 = vmatprep.mubr.msk.f32.mxu0 %vm8709_vm0, %v8708_v0 }
 0x201   :  { %8411 = vmatprep.subr.mxu0 %v8708_v0 }
 0x202   :  { %v4963_v29 = vsub.f32 %v4894_v49, %v4962_v27  ;;  %8435 = vmatmul.mubr.f32.vlgmr.msra.gmra.mxu1 %v4962_v27  ;;  %8412 = vmatpush3.msra.mxu0 %v9273_v19 }
 0x203   :  { %8445 = vmatpush3.msk.msra.mxu1 %vm195_vm5, %v9258_v42  ;;  %8448 = vmatprep.mubr.msk.f32.mxu1 %vm8709_vm0, %v8708_v0 }
 0x204   :  { %8446 = vmatprep.subr.mxu1 %v8708_v0  ;;  %8414 = vmatmul.mubr.f32.vlgmr.msra.gmra.mxu0 %v4506_v20  ;;  %v4964_v30 = vand.u32 4294901760, %v4963_v29 }
 0x205   :  { %8447 = vmatpush3.msk.msra.mxu1 %vm9253_vm7, %v8712_v33  ;;  %8423 = vmatprep.subr.mxu0 %v8708_v0 }
 0x206   :  { %8449 = vmatmul.mubr.f32.vlgmr.msra.gmra.mxu1 %v4964_v30  ;;  %8458 = vmatprep.subr.mxu1 %v8708_v0  ;;  %v4965_v31 = vsub.f32 %v4963_v29, %v4964_v30 }
 0x207   :  { %8424 = vmatpush3.msk.msra.mxu0 %vm195_vm5, %v9258_v42  ;;  %8459 = vmatpush3.msk.msra.mxu1 %vm195_vm5, %v9258_v42 }
 0x208   :  { %8425 = vmatprep.subr.mxu0 %v8708_v0  ;;  %8460 = vmatprep.subr.mxu1 %v8708_v0  ;;  %v4966_v32 = vand.u32 4294901760, %v4965_v31 }
 0x209   :  { %8426 = vmatpush3.msk.msra.mxu0 %vm9253_vm7, %v8712_v33  ;;  %8427 = vmatprep.mubr.msk.f32.mxu0 %vm8709_vm0, %v8708_v0 }
 0x20a   :  { %8461 = vmatpush3.msk.msra.mxu1 %vm9253_vm7, %v8712_v33  ;;  %8462 = vmatprep.mubr.msk.f32.mxu1 %vm8709_vm0, %v8708_v0 }
 0x20b   :  { %8428 = vmatmul.mubr.f32.vlgmr.msra.gmra.mxu0 %v4966_v32  ;;  %8437 = vmatprep.subr.mxu0 %v8708_v0 }
 0x20c   :  { %8463 = vmatmul.mubr.f32.vlgmr.msra.gmra.mxu1 %v4962_v27  ;;  %8472 = vmatprep.subr.mxu1 %v8708_v0 }
 0x20d   :  { %8438 = vmatpush3.msra.mxu0 %v9269_v41  ;;  %8473 = vmatpush3.msra.mxu1 %v9287_v48 }
 0x20e   :  { %v3947_v34 = vpop.permute.xlu1 %3946  ;;  %8439 = vmatprep.subr.mxu0 %v8708_v0  ;;  %8474 = vmatprep.subr.mxu1 %v8708_v0 }
 0x20f   :  { %v3967_v12 = vmax.f32 %v9303_v5, %v3947_v34  ;;  %8440 = vmatpush3.msra.mxu0 %v9265_v45  ;;  %8441 = vmatprep.mubr.msk.f32.mxu0 %vm8709_vm0, %v8708_v0 }
 0x210   :  { %8475 = vmatpush3.msra.mxu1 %v9289_v60  ;;  %8476 = vmatprep.mubr.msk.f32.mxu1 %vm8709_vm0, %v8708_v0 }
 0x211   :  { %v5350_v25 = vsel %vm191_vm1, %v3967_v12, 0  ;;  %8442 = vmatmul.mubr.f32.vlgmr.msra.gmra.mxu0 %v4963_v29  ;;  %8451 = vmatprep.subr.mxu0 %v8708_v0 }
 0x212   :  { %v5418_v37 = vand.u32 4294901760, %v5350_v25  ;;  %8486 = vmatprep.subr.mxu1 %v8708_v0  ;;  %8452 = vmatpush3.msra.mxu0 %v9279_v51 }
 0x213   :  { %8453 = vmatprep.subr.mxu0 %v8708_v0  ;;  %8455 = vmatprep.mubr.msk.f32.mxu0 %vm8709_vm0, %v8708_v0 }
 0x214   :  { %v5419_v35 = vsub.f32 %v5350_v25, %v5418_v37  ;;  %8477 = vmatmul.mubr.f32.vlgmr.msra.gmra.mxu1 %v5418_v37  ;;  %8454 = vmatpush3.msra.mxu0 %v9273_v19 }
 0x215   :  { %8487 = vmatpush3.msk.msra.mxu1 %vm195_vm5, %v9258_v42  ;;  %8490 = vmatprep.mubr.msk.f32.mxu1 %vm8709_vm0, %v8708_v0 }
 0x216   :  { %8488 = vmatprep.subr.mxu1 %v8708_v0  ;;  %8456 = vmatmul.mubr.f32.vlgmr.msra.gmra.mxu0 %v4962_v27  ;;  %v5420_v38 = vand.u32 4294901760, %v5419_v35 }
 0x217   :  { %8489 = vmatpush3.msk.msra.mxu1 %vm9253_vm7, %v8712_v33  ;;  %8465 = vmatprep.subr.mxu0 %v8708_v0 }
 0x218   :  { %8491 = vmatmul.mubr.f32.vlgmr.msra.gmra.mxu1 %v5420_v38  ;;  %8500 = vmatprep.subr.mxu1 %v8708_v0  ;;  %v5421_v43 = vsub.f32 %v5419_v35, %v5420_v38 }
 0x219   :  { %8466 = vmatpush3.msk.msra.mxu0 %vm195_vm5, %v9258_v42  ;;  %8501 = vmatpush3.msk.msra.mxu1 %vm195_vm5, %v9258_v42 }
 0x21a   :  { %8467 = vmatprep.subr.mxu0 %v8708_v0  ;;  %8502 = vmatprep.subr.mxu1 %v8708_v0  ;;  %v5422_v3 = vand.u32 4294901760, %v5421_v43 }
 0x21b   :  { %8468 = vmatpush3.msk.msra.mxu0 %vm9253_vm7, %v8712_v33  ;;  %8469 = vmatprep.mubr.msk.f32.mxu0 %vm8709_vm0, %v8708_v0 }
 0x21c   :  { %8503 = vmatpush3.msk.msra.mxu1 %vm9253_vm7, %v8712_v33  ;;  %8504 = vmatprep.mubr.msk.f32.mxu1 %vm8709_vm0, %v8708_v0 }
 0x21d   :  { %8470 = vmatmul.mubr.f32.vlgmr.msra.gmra.mxu0 %v5422_v3  ;;  %8479 = vmatprep.subr.mxu0 %v8708_v0 }
 0x21e   :  { %8505 = vmatmul.mubr.f32.vlgmr.msra.gmra.mxu1 %v5418_v37  ;;  %8514 = vmatprep.subr.mxu1 %v8708_v0 }
 0x21f   :  { %8480 = vmatpush3.msra.mxu0 %v9269_v41  ;;  %8515 = vmatpush3.msra.mxu1 %v9287_v48 }
 0x220   :  { %v3949_v44 = vpop.permute.xlu0 %3948  ;;  %8481 = vmatprep.subr.mxu0 %v8708_v0  ;;  %8516 = vmatprep.subr.mxu1 %v8708_v0 }
 0x221   :  { %v3968_v2 = vmax.f32 %v9308_v9, %v3949_v44  ;;  %8482 = vmatpush3.msra.mxu0 %v9265_v45  ;;  %8483 = vmatprep.mubr.msk.f32.mxu0 %vm8709_vm0, %v8708_v0 }
 0x222   :  { %8517 = vmatpush3.msra.mxu1 %v9289_v60  ;;  %8518 = vmatprep.mubr.msk.f32.mxu1 %vm8709_vm0, %v8708_v0 }
 0x223   :  { %v5806_v47 = vsel %vm191_vm1, %v3968_v2, 0  ;;  %8484 = vmatmul.mubr.f32.vlgmr.msra.gmra.mxu0 %v5419_v35  ;;  %8493 = vmatprep.subr.mxu0 %v8708_v0 }
 0x224   :  { %v5874_v52 = vand.u32 4294901760, %v5806_v47  ;;  %8528 = vmatprep.subr.mxu1 %v8708_v0  ;;  %8494 = vmatpush3.msra.mxu0 %v9279_v51 }
 0x225   :  { %8495 = vmatprep.subr.mxu0 %v8708_v0  ;;  %8497 = vmatprep.mubr.msk.f32.mxu0 %vm8709_vm0, %v8708_v0 }
 0x226   :  { %v5875_v53 = vsub.f32 %v5806_v47, %v5874_v52  ;;  %8519 = vmatmul.mubr.f32.vlgmr.msra.gmra.mxu1 %v5874_v52  ;;  %8496 = vmatpush3.msra.mxu0 %v9273_v19 }
 0x227   :  { %8529 = vmatpush3.msk.msra.mxu1 %vm195_vm5, %v9258_v42  ;;  %8532 = vmatprep.mubr.msk.f32.mxu1 %vm8709_vm0, %v8708_v0 }
 0x228   :  { %8530 = vmatprep.subr.mxu1 %v8708_v0  ;;  %8498 = vmatmul.mubr.f32.vlgmr.msra.gmra.mxu0 %v5418_v37  ;;  %v5876_v54 = vand.u32 4294901760, %v5875_v53 }
 0x229   :  { %8531 = vmatpush3.msk.msra.mxu1 %vm9253_vm7, %v8712_v33  ;;  %8507 = vmatprep.subr.mxu0 %v8708_v0 }
 0x22a   :  { %8533 = vmatmul.mubr.f32.vlgmr.msra.gmra.mxu1 %v5876_v54  ;;  %8542 = vmatprep.subr.mxu1 %v8708_v0  ;;  %v5877_v55 = vsub.f32 %v5875_v53, %v5876_v54 }
 0x22b   :  { %8508 = vmatpush3.msk.msra.mxu0 %vm195_vm5, %v9258_v42  ;;  %8543 = vmatpush3.msk.msra.mxu1 %vm195_vm5, %v9258_v42 }
 0x22c   :  { %8509 = vmatprep.subr.mxu0 %v8708_v0  ;;  %8544 = vmatprep.subr.mxu1 %v8708_v0  ;;  %v5878_v57 = vand.u32 4294901760, %v5877_v55 }
 0x22d   :  { %8510 = vmatpush3.msk.msra.mxu0 %vm9253_vm7, %v8712_v33  ;;  %8511 = vmatprep.mubr.msk.f32.mxu0 %vm8709_vm0, %v8708_v0 }
 0x22e   :  { %8545 = vmatpush3.msk.msra.mxu1 %vm9253_vm7, %v8712_v33  ;;  %8546 = vmatprep.mubr.msk.f32.mxu1 %vm8709_vm0, %v8708_v0 }
 0x22f   :  { %8512 = vmatmul.mubr.f32.vlgmr.msra.gmra.mxu0 %v5878_v57  ;;  %8521 = vmatprep.subr.mxu0 %v8708_v0 }
 0x230   :  { %8547 = vmatmul.mubr.f32.vlgmr.msra.gmra.mxu1 %v5874_v52  ;;  %8556 = vmatprep.subr.mxu1 %v8708_v0 }
 0x231   :  { %8522 = vmatpush3.msra.mxu0 %v9269_v41  ;;  %8557 = vmatpush3.msra.mxu1 %v9287_v48 }
 0x232   :  { %v3951_v61 = vpop.permute.xlu1 %3950  ;;  %8523 = vmatprep.subr.mxu0 %v8708_v0  ;;  %8558 = vmatprep.subr.mxu1 %v8708_v0 }
 0x233   :  { %v3969_v36 = vmax.f32 %v9313_v14, %v3951_v61  ;;  %8524 = vmatpush3.msra.mxu0 %v9265_v45  ;;  %8525 = vmatprep.mubr.msk.f32.mxu0 %vm8709_vm0, %v8708_v0 }
 0x234   :  { %8559 = vmatpush3.msra.mxu1 %v9289_v60  ;;  %8560 = vmatprep.mubr.msk.f32.mxu1 %vm8709_vm0, %v8708_v0 }
 0x235   :  { %v6262_v50 = vsel %vm191_vm1, %v3969_v36, 0  ;;  %8526 = vmatmul.mubr.f32.vlgmr.msra.gmra.mxu0 %v5875_v53  ;;  %8535 = vmatprep.subr.mxu0 %v8708_v0 }
 0x236   :  { %v6330_v63 = vand.u32 4294901760, %v6262_v50  ;;  %8570 = vmatprep.subr.mxu1 %v8708_v0  ;;  %8536 = vmatpush3.msra.mxu0 %v9279_v51 }
 0x237   :  { %8537 = vmatprep.subr.mxu0 %v8708_v0  ;;  %8539 = vmatprep.mubr.msk.f32.mxu0 %vm8709_vm0, %v8708_v0 }
 0x238   :  { %v6331_v4 = vsub.f32 %v6262_v50, %v6330_v63  ;;  %8561 = vmatmul.mubr.f32.vlgmr.msra.gmra.mxu1 %v6330_v63  ;;  %8538 = vmatpush3.msra.mxu0 %v9273_v19 }
 0x239   :  { %8571 = vmatpush3.msk.msra.mxu1 %vm195_vm5, %v9258_v42  ;;  %8574 = vmatprep.mubr.msk.f32.mxu1 %vm8709_vm0, %v8708_v0 }
 0x23a   :  { %8572 = vmatprep.subr.mxu1 %v8708_v0  ;;  %8540 = vmatmul.mubr.f32.vlgmr.msra.gmra.mxu0 %v5874_v52  ;;  %v6332_v5 = vand.u32 4294901760, %v6331_v4 }
 0x23b   :  { %8573 = vmatpush3.msk.msra.mxu1 %vm9253_vm7, %v8712_v33  ;;  %8549 = vmatprep.subr.mxu0 %v8708_v0 }
 0x23c   :  { %8575 = vmatmul.mubr.f32.vlgmr.msra.gmra.mxu1 %v6332_v5  ;;  %8584 = vmatprep.subr.mxu1 %v8708_v0  ;;  %v6333_v7 = vsub.f32 %v6331_v4, %v6332_v5 }
 0x23d   :  { %8550 = vmatpush3.msk.msra.mxu0 %vm195_vm5, %v9258_v42  ;;  %8585 = vmatpush3.msk.msra.mxu1 %vm195_vm5, %v9258_v42 }
 0x23e   :  { %8551 = vmatprep.subr.mxu0 %v8708_v0  ;;  %8586 = vmatprep.subr.mxu1 %v8708_v0  ;;  %v6334_v9 = vand.u32 4294901760, %v6333_v7 }
 0x23f   :  { %8552 = vmatpush3.msk.msra.mxu0 %vm9253_vm7, %v8712_v33  ;;  %8553 = vmatprep.mubr.msk.f32.mxu0 %vm8709_vm0, %v8708_v0 }
 0x240   :  { %8587 = vmatpush3.msk.msra.mxu1 %vm9253_vm7, %v8712_v33  ;;  %8588 = vmatprep.mubr.msk.f32.mxu1 %vm8709_vm0, %v8708_v0 }
 0x241   :  { %8554 = vmatmul.mubr.f32.vlgmr.msra.gmra.mxu0 %v6334_v9  ;;  %8563 = vmatprep.subr.mxu0 %v8708_v0 }
 0x242   :  { %8589 = vmatmul.mubr.f32.vlgmr.msra.gmra.mxu1 %v6330_v63  ;;  %8598 = vmatprep.subr.mxu1 %v8708_v0 }
 0x243   :  { %8564 = vmatpush3.msra.mxu0 %v9269_v41  ;;  %8599 = vmatpush3.msra.mxu1 %v9287_v48 }
 0x244   :  { %v3953_v58 = vpop.permute.xlu0 %3952  ;;  %8565 = vmatprep.subr.mxu0 %v8708_v0  ;;  %8600 = vmatprep.subr.mxu1 %v8708_v0 }
 0x245   :  { %v3970_v14 = vmax.f32 %v9318_v28, %v3953_v58  ;;  %8566 = vmatpush3.msra.mxu0 %v9265_v45  ;;  %8567 = vmatprep.mubr.msk.f32.mxu0 %vm8709_vm0, %v8708_v0 }
 0x246   :  { %8601 = vmatpush3.msra.mxu1 %v9289_v60  ;;  %8602 = vmatprep.mubr.msk.f32.mxu1 %vm8709_vm0, %v8708_v0 }
 0x247   :  { %v6718_v11 = vsel %vm191_vm1, %v3970_v14, 0  ;;  %8568 = vmatmul.mubr.f32.vlgmr.msra.gmra.mxu0 %v6331_v4  ;;  %8577 = vmatprep.subr.mxu0 %v8708_v0 }
 0x248   :  { %v6786_v59 = vand.u32 4294901760, %v6718_v11  ;;  %8612 = vmatprep.subr.mxu1 %v8708_v0  ;;  %8578 = vmatpush3.msra.mxu0 %v9279_v51 }
 0x249   :  { %8579 = vmatprep.subr.mxu0 %v8708_v0  ;;  %8581 = vmatprep.mubr.msk.f32.mxu0 %vm8709_vm0, %v8708_v0 }
 0x24a   :  { %v6787_v28 = vsub.f32 %v6718_v11, %v6786_v59  ;;  %8603 = vmatmul.mubr.f32.vlgmr.msra.gmra.mxu1 %v6786_v59  ;;  %8580 = vmatpush3.msra.mxu0 %v9273_v19 }
 0x24b   :  { %8613 = vmatpush3.msk.msra.mxu1 %vm195_vm5, %v9258_v42  ;;  %8616 = vmatprep.mubr.msk.f32.mxu1 %vm8709_vm0, %v8708_v0 }
 0x24c   :  { %8614 = vmatprep.subr.mxu1 %v8708_v0  ;;  %8582 = vmatmul.mubr.f32.vlgmr.msra.gmra.mxu0 %v6330_v63  ;;  %v6788_v39 = vand.u32 4294901760, %v6787_v28 }
 0x24d   :  { %8615 = vmatpush3.msk.msra.mxu1 %vm9253_vm7, %v8712_v33  ;;  %8591 = vmatprep.subr.mxu0 %v8708_v0 }
 0x24e   :  { %8617 = vmatmul.mubr.f32.vlgmr.msra.gmra.mxu1 %v6788_v39  ;;  %8626 = vmatprep.subr.mxu1 %v8708_v0  ;;  %v6789_v15 = vsub.f32 %v6787_v28, %v6788_v39 }
 0x24f   :  { %8592 = vmatpush3.msk.msra.mxu0 %vm195_vm5, %v9258_v42  ;;  %8627 = vmatpush3.msk.msra.mxu1 %vm195_vm5, %v9258_v42 }
 0x250   :  { %8593 = vmatprep.subr.mxu0 %v8708_v0  ;;  %8628 = vmatprep.subr.mxu1 %v8708_v0  ;;  %v6790_v16 = vand.u32 4294901760, %v6789_v15 }
 0x251   :  { %8594 = vmatpush3.msk.msra.mxu0 %vm9253_vm7, %v8712_v33  ;;  %8595 = vmatprep.mubr.msk.f32.mxu0 %vm8709_vm0, %v8708_v0 }
 0x252   :  { %8629 = vmatpush3.msk.msra.mxu1 %vm9253_vm7, %v8712_v33  ;;  %8630 = vmatprep.mubr.msk.f32.mxu1 %vm8709_vm0, %v8708_v0 }
 0x253   :  { %8596 = vmatmul.mubr.f32.vlgmr.msra.gmra.mxu0 %v6790_v16  ;;  %8605 = vmatprep.subr.mxu0 %v8708_v0 }
 0x254   :  { %8631 = vmatmul.mubr.f32.vlgmr.msra.gmra.mxu1 %v6786_v59  ;;  %8640 = vmatprep.subr.mxu1 %v8708_v0 }
 0x255   :  { %8606 = vmatpush3.msra.mxu0 %v9269_v41  ;;  %8641 = vmatpush3.msra.mxu1 %v9287_v48 }
 0x256   :  { %v3955_v1 = vpop.permute.xlu1 %3954  ;;  %8607 = vmatprep.subr.mxu0 %v8708_v0  ;;  %8642 = vmatprep.subr.mxu1 %v8708_v0 }
 0x257   :  { %v3971_v6 = vmax.f32 %v9331_v56, %v3955_v1  ;;  %8608 = vmatpush3.msra.mxu0 %v9265_v45  ;;  %8609 = vmatprep.mubr.msk.f32.mxu0 %vm8709_vm0, %v8708_v0 }
 0x258   :  { %8643 = vmatpush3.msra.mxu1 %v9289_v60  ;;  %8644 = vmatprep.mubr.msk.f32.mxu1 %vm8709_vm0, %v8708_v0 }
 0x259   :  { %v7174_v18 = vsel %vm191_vm1, %v3971_v6, 0  ;;  %8610 = vmatmul.mubr.f32.vlgmr.msra.gmra.mxu0 %v6787_v28  ;;  %8619 = vmatprep.subr.mxu0 %v8708_v0 }
 0x25a   :  { %v7242_v48 = vand.u32 4294901760, %v7174_v18  ;;  %8654 = vmatprep.subr.mxu1 %v8708_v0  ;;  %8620 = vmatpush3.msra.mxu0 %v9279_v51 }
 0x25b   :  { %8621 = vmatprep.subr.mxu0 %v8708_v0  ;;  %8623 = vmatprep.mubr.msk.f32.mxu0 %vm8709_vm0, %v8708_v0 }
 0x25c   :  { %v7243_v56 = vsub.f32 %v7174_v18, %v7242_v48  ;;  %8645 = vmatmul.mubr.f32.vlgmr.msra.gmra.mxu1 %v7242_v48  ;;  %8622 = vmatpush3.msra.mxu0 %v9273_v19 }
 0x25d   :  { %8655 = vmatpush3.msk.msra.mxu1 %vm195_vm5, %v9258_v42  ;;  %8658 = vmatprep.mubr.msk.f32.mxu1 %vm8709_vm0, %v8708_v0 }
 0x25e   :  { %8656 = vmatprep.subr.mxu1 %v8708_v0  ;;  %8624 = vmatmul.mubr.f32.vlgmr.msra.gmra.mxu0 %v6786_v59  ;;  %v7244_v60 = vand.u32 4294901760, %v7243_v56 }
 0x25f   :  { %8657 = vmatpush3.msk.msra.mxu1 %vm9253_vm7, %v8712_v33  ;;  %8633 = vmatprep.subr.mxu0 %v8708_v0 }
 0x260   :  { %8659 = vmatmul.mubr.f32.vlgmr.msra.gmra.mxu1 %v7244_v60  ;;  %8668 = vmatprep.subr.mxu1 %v8708_v0  ;;  %v7245_v8 = vsub.f32 %v7243_v56, %v7244_v60 }
 0x261   :  { %8634 = vmatpush3.msk.msra.mxu0 %vm195_vm5, %v9258_v42  ;;  %8669 = vmatpush3.msk.msra.mxu1 %vm195_vm5, %v9258_v42 }
 0x262   :  { %8635 = vmatprep.subr.mxu0 %v8708_v0  ;;  %8670 = vmatprep.subr.mxu1 %v8708_v0  ;;  %v7246_v21 = vand.u32 4294901760, %v7245_v8 }
 0x263   :  { %8636 = vmatpush3.msk.msra.mxu0 %vm9253_vm7, %v8712_v33  ;;  %8637 = vmatprep.mubr.msk.f32.mxu0 %vm8709_vm0, %v8708_v0 }
 0x264   :  { %8671 = vmatpush3.msk.msra.mxu1 %vm9253_vm7, %v8712_v33  ;;  %8672 = vmatprep.mubr.msk.f32.mxu1 %vm8709_vm0, %v8708_v0 }
 0x265   :  { %8638 = vmatmul.mubr.f32.vlgmr.msra.gmra.mxu0 %v7246_v21  ;;  %8647 = vmatprep.subr.mxu0 %v8708_v0 }
 0x266   :  { %8673 = vmatmul.mubr.f32.vlgmr.msra.gmra.mxu1 %v7242_v48  ;;  %8648 = vmatpush3.msra.mxu0 %v9269_v41 }
 0x267   :  { %8649 = vmatprep.subr.mxu0 %v8708_v0  ;;  %8651 = vmatprep.mubr.msk.f32.mxu0 %vm8709_vm0, %v8708_v0 }
 0x268   :  { %8650 = vmatpush3.msra.mxu0 %v9265_v45 }
 0x269   :  { %8652 = vmatmul.mubr.f32.vlgmr.msra.gmra.mxu0 %v7243_v56  ;;  %8661 = vmatprep.subr.mxu0 %v8708_v0 }
 0x26a   :  { %8662 = vmatpush3.msra.mxu0 %v9279_v51  ;;  %8665 = vmatprep.mubr.msk.f32.mxu0 %vm8709_vm0, %v8708_v0 }
 0x26b   :  { %8663 = vmatprep.subr.mxu0 %v8708_v0 }
 0x26c   :  { %8664 = vmatpush3.msra.mxu0 %v9273_v19 }
 0x26d   :  { %8666 = vmatmul.mubr.f32.vlgmr.msra.gmra.mxu0 %v7242_v48 }
 0x29e   :  { %v4136_v10 = vpop.f32.mrf.mxu1 }
 0x2a0   :  { %v8352_v42 = vpop.f32.mrf.mxu1 }
 0x2a2   :  { %v4285_v41 = vpop.f32.mrf.mxu1 }
 0x2a4   :  { %v8366_v33 = vpop.f32.mrf.mxu1 }
 0x2a6   :  { %v4056_v62 = vpop.f32.mrf.mxu0  ;;  %v4433_v13 = vpop.f32.mrf.mxu1 }
 0x2a7   :  { %v4137_v20 = vadd.f32 %v4136_v10, %v4056_v62 }
 0x2a8   :  { %v8345_v45 = vpop.f32.mrf.mxu0  ;;  %v8380_v23 = vpop.f32.mrf.mxu1 }
 0x2ab   :  { %v4211_v24 = vpop.f32.mrf.mxu0 }
 0x2ac   :  { %v4212_v46 = vadd.f32 %v4211_v24, %v4137_v20 }
 0x2ad   :  { %v8359_v51 = vpop.f32.mrf.mxu0 }
 0x2ae   :  { %v4286_v26 = vadd.f32 %v4285_v41, %v4212_v46 }
 0x2b0   :  { %v4592_v17 = vpop.f32.mrf.mxu1  ;;  %v4361_v22 = vpop.f32.mrf.mxu0 }
 0x2b1   :  { %v4362_v40 = vadd.f32 %v4361_v22, %v4286_v26 }
 0x2b2   :  { %v8394_v0 = vpop.f32.mrf.mxu1  ;;  %v8373_v19 = vpop.f32.mrf.mxu0 }
 0x2b3   :  { %v4434_v49 = vadd.f32 %v4433_v13, %v4362_v40 }
 0x2b4   :  { %v4741_v27 = vpop.f32.mrf.mxu1 }
 0x2b5   :  { %7630 = vst.msk [vmem:[%s9716_s1] sm:$0x7f] %vm7629_vm8, %v4434_v49 }
 0x2b6   :  { %v8408_v29 = vpop.f32.mrf.mxu1 }
 0x2b8   :  { %v4512_v30 = vpop.f32.mrf.mxu0 }
 0x2b9   :  { %v4889_v31 = vpop.f32.mrf.mxu1  ;;  %v4593_v12 = vadd.f32 %v4592_v17, %v4512_v30 }
 0x2ba   :  { %v8387_v32 = vpop.f32.mrf.mxu0 }
 0x2bb   :  { %v8422_v34 = vpop.f32.mrf.mxu1 }
 0x2be   :  { %v4667_v25 = vpop.f32.mrf.mxu0 }
 0x2bf   :  { %v4668_v37 = vadd.f32 %v4667_v25, %v4593_v12 }
 0x2c0   :  { %v8401_v35 = vpop.f32.mrf.mxu0 }
 0x2c1   :  { %v4742_v38 = vadd.f32 %v4741_v27, %v4668_v37 }
 0x2c2   :  { %v5048_v43 = vpop.f32.mrf.mxu1 }
 0x2c4   :  { %v8436_v3 = vpop.f32.mrf.mxu1  ;;  %v4817_v44 = vpop.f32.mrf.mxu0 }
 0x2c5   :  { %v4818_v2 = vadd.f32 %v4817_v44, %v4742_v38 }
 0x2c6   :  { %v5197_v47 = vpop.f32.mrf.mxu1  ;;  %v8415_v52 = vpop.f32.mrf.mxu0 }
 0x2c7   :  { %v4890_v53 = vadd.f32 %v4889_v31, %v4818_v2 }
 0x2c8   :  { %v8450_v54 = vpop.f32.mrf.mxu1 }
 0x2c9   :  { %7631 = vst.msk [vmem:[%s9716_s1 + $0x8] sm:$0x7f] %vm7629_vm8, %v4890_v53 }
 0x2cb   :  { %v4968_v55 = vpop.f32.mrf.mxu0 }
 0x2cc   :  { %v5345_v57 = vpop.f32.mrf.mxu1  ;;  %v5049_v50 = vadd.f32 %v5048_v43, %v4968_v55 }
 0x2cd   :  { %v8429_v61 = vpop.f32.mrf.mxu0 }
 0x2ce   :  { %v8464_v36 = vpop.f32.mrf.mxu1 }
 0x2d1   :  { %v5123_v63 = vpop.f32.mrf.mxu0 }
 0x2d2   :  { %v5124_v4 = vadd.f32 %v5123_v63, %v5049_v50 }
 0x2d3   :  { %v8443_v5 = vpop.f32.mrf.mxu0 }
 0x2d4   :  { %v5504_v7 = vpop.f32.mrf.mxu1  ;;  %v5198_v9 = vadd.f32 %v5197_v47, %v5124_v4 }
 0x2d6   :  { %v8478_v58 = vpop.f32.mrf.mxu1  ;;  %v5273_v14 = vpop.f32.mrf.mxu0 }
 0x2d7   :  { %v5274_v11 = vadd.f32 %v5273_v14, %v5198_v9 }
 0x2d8   :  { %v5653_v59 = vpop.f32.mrf.mxu1  ;;  %v8457_v28 = vpop.f32.mrf.mxu0 }
 0x2d9   :  { %v5346_v39 = vadd.f32 %v5345_v57, %v5274_v11 }
 0x2da   :  { %v8492_v15 = vpop.f32.mrf.mxu1 }
 0x2db   :  { %7632 = vst.msk [vmem:[%s9716_s1 + $0x10] sm:$0x7f] %vm7629_vm8, %v5346_v39 }
 0x2dd   :  { %v5424_v16 = vpop.f32.mrf.mxu0 }
 0x2de   :  { %v5801_v1 = vpop.f32.mrf.mxu1  ;;  %v5505_v48 = vadd.f32 %v5504_v7, %v5424_v16 }
 0x2df   :  { %v8471_v6 = vpop.f32.mrf.mxu0 }
 0x2e0   :  { %v8506_v18 = vpop.f32.mrf.mxu1 }
 0x2e3   :  { %v5579_v56 = vpop.f32.mrf.mxu0 }
 0x2e4   :  { %v5580_v60 = vadd.f32 %v5579_v56, %v5505_v48 }
 0x2e5   :  { %v8485_v8 = vpop.f32.mrf.mxu0 }
 0x2e6   :  { %v5960_v21 = vpop.f32.mrf.mxu1  ;;  %v5654_v10 = vadd.f32 %v5653_v59, %v5580_v60 }
 0x2e8   :  { %v8520_v42 = vpop.f32.mrf.mxu1  ;;  %v5729_v41 = vpop.f32.mrf.mxu0 }
 0x2e9   :  { %v5730_v33 = vadd.f32 %v5729_v41, %v5654_v10 }
 0x2ea   :  { %v6109_v62 = vpop.f32.mrf.mxu1  ;;  %v8499_v13 = vpop.f32.mrf.mxu0 }
 0x2eb   :  { %v5802_v45 = vadd.f32 %v5801_v1, %v5730_v33 }
 0x2ec   :  { %v8534_v23 = vpop.f32.mrf.mxu1 }
 0x2ed   :  { %7633 = vst.msk [vmem:[%s9716_s1 + $0x18] sm:$0x7f] %vm7629_vm8, %v5802_v45 }
 0x2ef   :  { %v5880_v20 = vpop.f32.mrf.mxu0 }
 0x2f0   :  { %v6257_v24 = vpop.f32.mrf.mxu1  ;;  %v5961_v26 = vadd.f32 %v5960_v21, %v5880_v20 }
 0x2f1   :  { %v8513_v46 = vpop.f32.mrf.mxu0 }
 0x2f2   :  { %v8548_v51 = vpop.f32.mrf.mxu1 }
 0x2f5   :  { %v6035_v17 = vpop.f32.mrf.mxu0 }
 0x2f6   :  { %v6036_v22 = vadd.f32 %v6035_v17, %v5961_v26 }
 0x2f7   :  { %v8527_v40 = vpop.f32.mrf.mxu0 }
 0x2f8   :  { %v6416_v0 = vpop.f32.mrf.mxu1  ;;  %v6110_v19 = vadd.f32 %v6109_v62, %v6036_v22 }
 0x2fa   :  { %v8562_v49 = vpop.f32.mrf.mxu1  ;;  %v6185_v27 = vpop.f32.mrf.mxu0 }
 0x2fb   :  { %v6186_v29 = vadd.f32 %v6185_v27, %v6110_v19 }
 0x2fc   :  { %v6565_v30 = vpop.f32.mrf.mxu1  ;;  %v8541_v31 = vpop.f32.mrf.mxu0 }
 0x2fd   :  { %v6258_v32 = vadd.f32 %v6257_v24, %v6186_v29 }
 0x2fe   :  { %v8576_v34 = vpop.f32.mrf.mxu1 }
 0x2ff   :  { %7634 = vst.msk [vmem:[%s9716_s1 + $0x20] sm:$0x7f] %vm7629_vm8, %v6258_v32 }
 0x301   :  { %v6336_v12 = vpop.f32.mrf.mxu0 }
 0x302   :  { %v6713_v25 = vpop.f32.mrf.mxu1  ;;  %v6417_v38 = vadd.f32 %v6416_v0, %v6336_v12 }
 0x303   :  { %v8555_v37 = vpop.f32.mrf.mxu0 }
 0x304   :  { %v8590_v35 = vpop.f32.mrf.mxu1 }
 0x307   :  { %v6491_v43 = vpop.f32.mrf.mxu0 }
 0x308   :  { %v6492_v3 = vadd.f32 %v6491_v43, %v6417_v38 }
 0x309   :  { %v8569_v44 = vpop.f32.mrf.mxu0 }
 0x30a   :  { %v6872_v2 = vpop.f32.mrf.mxu1  ;;  %v6566_v47 = vadd.f32 %v6565_v30, %v6492_v3 }
 0x30c   :  { %v8604_v52 = vpop.f32.mrf.mxu1  ;;  %v6641_v53 = vpop.f32.mrf.mxu0 }
 0x30d   :  { %v6642_v54 = vadd.f32 %v6641_v53, %v6566_v47 }
 0x30e   :  { %v7021_v55 = vpop.f32.mrf.mxu1  ;;  %v8583_v57 = vpop.f32.mrf.mxu0 }
 0x30f   :  { %v6714_v61 = vadd.f32 %v6713_v25, %v6642_v54 }
 0x310   :  { %v8618_v36 = vpop.f32.mrf.mxu1 }
 0x311   :  { %7635 = vst.msk [vmem:[%s9716_s1 + $0x28] sm:$0x7f] %vm7629_vm8, %v6714_v61 }
 0x313   :  { %v6792_v50 = vpop.f32.mrf.mxu0 }
 0x314   :  { %v7169_v63 = vpop.f32.mrf.mxu1  ;;  %v6873_v7 = vadd.f32 %v6872_v2, %v6792_v50 }
 0x315   :  { %v8597_v4 = vpop.f32.mrf.mxu0 }
 0x316   :  { %v8632_v5 = vpop.f32.mrf.mxu1 }
 0x319   :  { %v6947_v9 = vpop.f32.mrf.mxu0 }
 0x31a   :  { %v6948_v58 = vadd.f32 %v6947_v9, %v6873_v7 }
 0x31b   :  { %v8611_v14 = vpop.f32.mrf.mxu0 }
 0x31c   :  { %v7328_v11 = vpop.f32.mrf.mxu1  ;;  %v7022_v59 = vadd.f32 %v7021_v55, %v6948_v58 }
 0x31e   :  { %v8646_v28 = vpop.f32.mrf.mxu1  ;;  %v7097_v39 = vpop.f32.mrf.mxu0 }
 0x31f   :  { %v7098_v15 = vadd.f32 %v7097_v39, %v7022_v59 }
 0x320   :  { %v7477_v16 = vpop.f32.mrf.mxu1  ;;  %v8625_v1 = vpop.f32.mrf.mxu0 }
 0x321   :  { %v7170_v6 = vadd.f32 %v7169_v63, %v7098_v15 }
 0x322   :  { %v8660_v18 = vpop.f32.mrf.mxu1 }
 0x323   :  { %7636 = vst.msk [vmem:[%s9716_s1 + $0x30] sm:$0x7f] %vm7629_vm8, %v7170_v6 }
 0x325   :  { %v7248_v48 = vpop.f32.mrf.mxu0 }
 0x326   :  { %v7625_v56 = vpop.f32.mrf.mxu1  ;;  %v7329_v8 = vadd.f32 %v7328_v11, %v7248_v48 }
 0x327   :  { %v8639_v60 = vpop.f32.mrf.mxu0 }
 0x328   :  { %v8674_v21 = vpop.f32.mrf.mxu1 }
 0x329   :  { %v7403_v10 = vpop.f32.mrf.mxu0 }
 0x32a   :  { %v7404_v42 = vadd.f32 %v7403_v10, %v7329_v8 }
 0x32b   :  { %v8653_v41 = vpop.f32.mrf.mxu0 }
 0x32c   :  { %v7478_v33 = vadd.f32 %v7477_v16, %v7404_v42 }
 0x32d   :  { %v7553_v62 = vpop.f32.mrf.mxu0 }
 0x32e   :  { %v7554_v13 = vadd.f32 %v7553_v62, %v7478_v33 }
 0x32f   :  { %v8667_v45 = vpop.f32.mrf.mxu0 }
 0x330   :  { %v7626_v23 = vadd.f32 %v7625_v56, %v7554_v13 }
 0x332   :  { %7637 = vst.msk [vmem:[%s9716_s1 + $0x38] sm:$0x7f] %vm7629_vm8, %v7626_v23 }
 0x333   :  { %7642 = vsyncpa [#allocation3], 1 }

</bundles_post_ra>
